<compile_context>
chip_gen: v7x
topology: tpu7x:2x2x1
jax: 0.10.0
libtpu: 0.0.40
codegen_flags: <defaults>
</compile_context>

<pallas_src>
import jax
import jax.numpy as jnp
from jax.experimental import pallas as pl
from jax.experimental.pallas import tpu as pltpu

# Synthetic encoder feature sizes (come from hydra configs in the original).
RGB_STATIC_FEAT = 64
DEPTH_STATIC_FEAT = 32
RGB_GRIPPER_FEAT = 32
DEPTH_GRIPPER_FEAT = 16
TACTILE_FEAT = 32
PROPRIO_FEAT = 16

FEAT_SIZES = (RGB_STATIC_FEAT, DEPTH_STATIC_FEAT, RGB_GRIPPER_FEAT,
              DEPTH_GRIPPER_FEAT, TACTILE_FEAT, PROPRIO_FEAT)
LATENT_SIZE = sum(FEAT_SIZES)                        # 192

LANE = 128
OUT_PAD = ((LATENT_SIZE + LANE - 1) // LANE) * LANE  # 256: lane-dense output


def _round_up(x, m):
    return ((x + m - 1) // m) * m


def _fused_concat_encoder_kernel(
        rgb_s_ref, dep_s_ref, rgb_g_ref, dep_g_ref, tac_ref, state_ref,
        w_rs_ref, w_ds_ref, w_rg_ref, w_dg_ref, w_tc_ref, w_pr_ref,
        bias_ref, out_ref):
    """One row tile: six bf16 MXU matmuls (f32 accumulate) against lane-offset
    padded weights, summed into a single (tn, OUT_PAD) accumulator that starts
    from the concatenated bias, then ONE full-width lane-dense store."""
    acc = bias_ref[...]                                  # (1, OUT_PAD) f32
    for x_ref, w_ref in ((rgb_s_ref, w_rs_ref),
                         (dep_s_ref, w_ds_ref),
                         (rgb_g_ref, w_rg_ref),
                         (dep_g_ref, w_dg_ref),
                         (tac_ref,   w_tc_ref),
                         (state_ref, w_pr_ref)):
        # Cast to bf16 in-kernel (VPU) right before the MXU dot; activations
        # travel through HBM as f32 exactly once.
        acc = acc + jnp.dot(x_ref[...].astype(jnp.bfloat16), w_ref[...],
                            preferred_element_type=jnp.float32)
    out_ref[...] = acc                                   # single 256-wide store


def _pick_row_tile(n, tn_max=512):
    """Multiple-of-8 row tile; >=2 grid steps when there is enough work so a
    v7x megacore can split the grid across both TensorCores."""
    if n >= 16:
        tn = min(tn_max, _round_up(-(-n // 2), 8))
    else:
        tn = _round_up(max(n, 1), 8)
    return tn


def fused_encode(flat_inputs, params, tn_max=512):
    """flat_inputs: list of 6 (N, D_i) f32 arrays; params: 6 (W_i, b_i) pairs.
    Returns (N, LATENT_SIZE) f32."""
    n = flat_inputs[0].shape[0]
    tn = _pick_row_tile(n, tn_max)
    n_pad = _round_up(n, tn)
    grid = n_pad // tn

    # Only pad rows when the adaptive tile does not already divide N; padded
    # rows produce bias-only garbage that is sliced away below.
    acts = [x if n_pad == n else jnp.pad(x, ((0, n_pad - n), (0, 0)))
            for x in flat_inputs]

    # Zero-padded bf16 weights placing each modality at its lane offset,
    # plus one concatenated f32 bias row covering the whole 256-lane output.
    w_pads = []
    bias = jnp.zeros((1, OUT_PAD), jnp.float32)
    off = 0
    for (w, b), width in zip(params, FEAT_SIZES):
        wp = jnp.zeros((w.shape[0], OUT_PAD), jnp.bfloat16)
        wp = wp.at[:, off:off + width].set(w.astype(jnp.bfloat16))
        w_pads.append(wp)
        bias = bias.at[:, off:off + width].set(
            b.astype(jnp.float32).reshape(1, width))
        off += width

    args = []
    in_specs = []
    for x in acts:
        # Row-tiled f32 activations: pipelined HBM->VMEM DMA per grid step.
        in_specs.append(pl.BlockSpec((tn, x.shape[1]), lambda i: (i, 0)))
        args.append(x)
    for wp in w_pads:
        # Constant index_map: weights DMA'd once, VMEM-resident across rows.
        in_specs.append(pl.BlockSpec(wp.shape, lambda i: (0, 0)))
        args.append(wp)
    in_specs.append(pl.BlockSpec(bias.shape, lambda i: (0, 0)))
    args.append(bias)

    flops = 2 * n_pad * sum(wp.shape[0] for wp in w_pads) * OUT_PAD
    bytes_accessed = (sum(a.size * a.dtype.itemsize for a in args)
                      + n_pad * OUT_PAD * 4)

    out = pl.pallas_call(
        _fused_concat_encoder_kernel,
        out_shape=jax.ShapeDtypeStruct((n_pad, OUT_PAD), jnp.float32),
        grid=(grid,),
        in_specs=in_specs,
        out_specs=pl.BlockSpec((tn, OUT_PAD), lambda i: (i, 0)),
        compiler_params=pltpu.CompilerParams(
            dimension_semantics=("parallel",),       # v7x: 2 TCs split row tiles
            vmem_limit_bytes=32 * 1024 * 1024),      # <=~20 MiB used at tn=512
        cost_estimate=pl.CostEstimate(
            flops=flops, transcendentals=0, bytes_accessed=bytes_accessed),
    )(*args)

    # TODO(synk): emit bf16 output instead of f32 if the downstream consumer
    # accepts it (halves the writeback bytes).
    return out[:n, :LATENT_SIZE]


def concat_encoders_forward(imgs, depth_imgs, state_obs, params, tn_max=512):
    """Mirrors ConcatEncoders.forward (single view, all modalities)."""
    views_num = len([1 for k in imgs.keys() if 'rgb_static' in k])
    assert views_num == 1, "only single-view path implemented"
    if 'rgb_static_0' in imgs:
        rgb_static = imgs['rgb_static_0']
        depth_static = depth_imgs['depth_static_0']
    else:
        rgb_static = imgs['rgb_static']
        depth_static = depth_imgs['depth_static']
    rgb_gripper = imgs['rgb_gripper']
    rgb_tactile = imgs['rgb_tactile']
    depth_gripper = depth_imgs['depth_gripper']

    b, s, c, h, w = rgb_static.shape
    rgb_static_f = rgb_static.reshape(b * s, c * h * w)
    # depth_static: unsqueeze(2) -> reshape(-1, 1, h, w) -> flatten per frame
    depth_static_f = depth_static.reshape(b * s, h * w)
    bg, sg, cg, hg, wg = rgb_gripper.shape
    rgb_gripper_f = rgb_gripper.reshape(bg * sg, cg * hg * wg)
    depth_gripper_f = depth_gripper.reshape(bg * sg, hg * wg)
    bt, st, ct, ht, wt = rgb_tactile.shape
    rgb_tactile_f = rgb_tactile.reshape(bt * st, ct * ht * wt)
    state_f = state_obs.reshape(b * s, state_obs.shape[-1])

    flat = [rgb_static_f, depth_static_f, rgb_gripper_f, depth_gripper_f,
            rgb_tactile_f, state_f]
    out = fused_encode(flat, params, tn_max=tn_max)
    return out.reshape(b, s, LATENT_SIZE)


def init_params(key, in_dims, out_dims):
    params = []
    for i, (din, dout) in enumerate(zip(in_dims, out_dims)):
        kw = jax.random.fold_in(key, 2 * i)
        kb = jax.random.fold_in(key, 2 * i + 1)
        w = jax.random.normal(kw, (din, dout), jnp.float32) * 0.02
        bias = jax.random.normal(kb, (1, dout), jnp.float32) * 0.01
        params.append((w, bias))
    return params


def _reference(flat, params, bf16=False):
    outs = []
    for f, (w, bias) in zip(flat, params):
        if bf16:  # emulate the kernel: bf16 operands, f32 accumulate
            f = f.astype(jnp.bfloat16).astype(jnp.float32)
            w = w.astype(jnp.bfloat16).astype(jnp.float32)
        outs.append(f @ w + bias)
    return jnp.concatenate(outs, axis=-1)


if __name__ == "__main__":
    key = jax.random.PRNGKey(0)
    b, s, h, w_ = 2, 8, 16, 16
    c_rgb, c_tac, n_state = 3, 6, 8
    ks = jax.random.split(key, 7)

    imgs = {
        'rgb_static': jax.random.normal(ks[0], (b, s, c_rgb, h, w_), jnp.float32),
        'rgb_gripper': jax.random.normal(ks[1], (b, s, c_rgb, h, w_), jnp.float32),
        'rgb_tactile': jax.random.normal(ks[2], (b, s, c_tac, h, w_), jnp.float32),
    }
    depth_imgs = {
        'depth_static': jax.random.normal(ks[3], (b, s, h, w_), jnp.float32),
        'depth_gripper': jax.random.normal(ks[4], (b, s, h, w_), jnp.float32),
    }
    state_obs = jax.random.normal(ks[5], (b, s, n_state), jnp.float32)

    in_dims = [c_rgb * h * w_, h * w_, c_rgb * h * w_, h * w_,
               c_tac * h * w_, n_state]
    out_dims = list(FEAT_SIZES)
    params = init_params(ks[6], in_dims, out_dims)

    out = concat_encoders_forward(imgs, depth_imgs, state_obs, params)
    out = jax.block_until_ready(out)
    assert out.shape == (b, s, LATENT_SIZE), out.shape

    flat_ref = [
        imgs['rgb_static'].reshape(b * s, -1),
        depth_imgs['depth_static'].reshape(b * s, -1),
        imgs['rgb_gripper'].reshape(b * s, -1),
        depth_imgs['depth_gripper'].reshape(b * s, -1),
        imgs['rgb_tactile'].reshape(b * s, -1),
        state_obs.reshape(b * s, -1),
    ]
    # Tight check against a bf16-operand / f32-accumulate reference.
    ref_bf16 = _reference(flat_ref, params, bf16=True).reshape(b, s, LATENT_SIZE)
    assert jnp.allclose(out, ref_bf16, rtol=2e-3, atol=2e-3), \
        float(jnp.max(jnp.abs(out - ref_bf16)))
    # Loose sanity check against the pure-f32 reference.
    ref_f32 = _reference(flat_ref, params, bf16=False).reshape(b, s, LATENT_SIZE)
    assert jnp.allclose(out, ref_f32, rtol=5e-2, atol=5e-2), \
        float(jnp.max(jnp.abs(out - ref_f32)))

    print("KERNEL_OK")
</pallas_src>

<mosaic_0001>
module attributes {stable_mosaic.version = 11 : i64} {
  func.func @_fused_concat_encoder_kernel(%arg0: i32, %arg1: memref<8x768xf32, #tpu.memory_space<vmem>>, %arg2: memref<8x256xf32, #tpu.memory_space<vmem>>, %arg3: memref<8x768xf32, #tpu.memory_space<vmem>>, %arg4: memref<8x256xf32, #tpu.memory_space<vmem>>, %arg5: memref<8x1536xf32, #tpu.memory_space<vmem>>, %arg6: memref<8x8xf32, #tpu.memory_space<vmem>>, %arg7: memref<768x256xbf16, #tpu.memory_space<vmem>>, %arg8: memref<256x256xbf16, #tpu.memory_space<vmem>>, %arg9: memref<768x256xbf16, #tpu.memory_space<vmem>>, %arg10: memref<256x256xbf16, #tpu.memory_space<vmem>>, %arg11: memref<1536x256xbf16, #tpu.memory_space<vmem>>, %arg12: memref<8x256xbf16, #tpu.memory_space<vmem>>, %arg13: memref<1x256xf32, #tpu.memory_space<vmem>>, %arg14: memref<8x256xf32, #tpu.memory_space<vmem>>) attributes {dimension_semantics = [#tpu.dimension_semantics<parallel>], iteration_bounds = array<i64: 2>, scalar_prefetch = 0 : i64, scratch_operands = 0 : i64, tpu.core_type = #tpu.core_type<tc>, window_params = [{transform_indices = @transform_0, window_bounds = array<i64: 8, 768>}, {transform_indices = @transform_1, window_bounds = array<i64: 8, 256>}, {transform_indices = @transform_2, window_bounds = array<i64: 8, 768>}, {transform_indices = @transform_3, window_bounds = array<i64: 8, 256>}, {transform_indices = @transform_4, window_bounds = array<i64: 8, 1536>}, {transform_indices = @transform_5, window_bounds = array<i64: 8, 8>}, {pipeline_mode = #tpu.pipeline_mode<synchronous>, transform_indices = @transform_6, window_bounds = array<i64: 768, 256>}, {pipeline_mode = #tpu.pipeline_mode<synchronous>, transform_indices = @transform_7, window_bounds = array<i64: 256, 256>}, {pipeline_mode = #tpu.pipeline_mode<synchronous>, transform_indices = @transform_8, window_bounds = array<i64: 768, 256>}, {pipeline_mode = #tpu.pipeline_mode<synchronous>, transform_indices = @transform_9, window_bounds = array<i64: 256, 256>}, {pipeline_mode = #tpu.pipeline_mode<synchronous>, transform_indices = @transform_10, window_bounds = array<i64: 1536, 256>}, {pipeline_mode = #tpu.pipeline_mode<synchronous>, transform_indices = @transform_11, window_bounds = array<i64: 8, 256>}, {pipeline_mode = #tpu.pipeline_mode<synchronous>, transform_indices = @transform_12, window_bounds = array<i64: 1, 256>}, {transform_indices = @transform_13, window_bounds = array<i64: 8, 256>}]} {
    %c0 = arith.constant 0 : index
    %c0_0 = arith.constant 0 : index
    %0 = vector.load %arg13[%c0, %c0_0] : memref<1x256xf32, #tpu.memory_space<vmem>>, vector<1x256xf32>
    %c0_1 = arith.constant 0 : index
    %c0_2 = arith.constant 0 : index
    %1 = vector.load %arg1[%c0_1, %c0_2] : memref<8x768xf32, #tpu.memory_space<vmem>>, vector<8x768xf32>
    %2 = arith.truncf %1 : vector<8x768xf32> to vector<8x768xbf16>
    %c0_3 = arith.constant 0 : index
    %c0_4 = arith.constant 0 : index
    %3 = vector.load %arg7[%c0_3, %c0_4] : memref<768x256xbf16, #tpu.memory_space<vmem>>, vector<768x256xbf16>
    %cst = arith.constant dense<0.000000e+00> : vector<8x256xf32>
    %4 = tpu.matmul %2, %3, %cst {dimension_numbers = #tpu.dot_dimension_numbers<[1], [0], [0], [1], [0, 0, 1, 1], [], []>} : vector<8x768xbf16>, vector<768x256xbf16>, vector<8x256xf32> -> vector<8x256xf32>
    %5 = vector.broadcast %0 : vector<1x256xf32> to vector<8x256xf32>
    %6 = arith.addf %5, %4 : vector<8x256xf32>
    %c0_5 = arith.constant 0 : index
    %c0_6 = arith.constant 0 : index
    %7 = vector.load %arg2[%c0_5, %c0_6] : memref<8x256xf32, #tpu.memory_space<vmem>>, vector<8x256xf32>
    %8 = arith.truncf %7 : vector<8x256xf32> to vector<8x256xbf16>
    %c0_7 = arith.constant 0 : index
    %c0_8 = arith.constant 0 : index
    %9 = vector.load %arg8[%c0_7, %c0_8] : memref<256x256xbf16, #tpu.memory_space<vmem>>, vector<256x256xbf16>
    %cst_9 = arith.constant dense<0.000000e+00> : vector<8x256xf32>
    %10 = tpu.matmul %8, %9, %cst_9 {dimension_numbers = #tpu.dot_dimension_numbers<[1], [0], [0], [1], [0, 0, 1, 1], [], []>} : vector<8x256xbf16>, vector<256x256xbf16>, vector<8x256xf32> -> vector<8x256xf32>
    %11 = arith.addf %6, %10 : vector<8x256xf32>
    %c0_10 = arith.constant 0 : index
    %c0_11 = arith.constant 0 : index
    %12 = vector.load %arg3[%c0_10, %c0_11] : memref<8x768xf32, #tpu.memory_space<vmem>>, vector<8x768xf32>
    %13 = arith.truncf %12 : vector<8x768xf32> to vector<8x768xbf16>
    %c0_12 = arith.constant 0 : index
    %c0_13 = arith.constant 0 : index
    %14 = vector.load %arg9[%c0_12, %c0_13] : memref<768x256xbf16, #tpu.memory_space<vmem>>, vector<768x256xbf16>
    %cst_14 = arith.constant dense<0.000000e+00> : vector<8x256xf32>
    %15 = tpu.matmul %13, %14, %cst_14 {dimension_numbers = #tpu.dot_dimension_numbers<[1], [0], [0], [1], [0, 0, 1, 1], [], []>} : vector<8x768xbf16>, vector<768x256xbf16>, vector<8x256xf32> -> vector<8x256xf32>
    %16 = arith.addf %11, %15 : vector<8x256xf32>
    %c0_15 = arith.constant 0 : index
    %c0_16 = arith.constant 0 : index
    %17 = vector.load %arg4[%c0_15, %c0_16] : memref<8x256xf32, #tpu.memory_space<vmem>>, vector<8x256xf32>
    %18 = arith.truncf %17 : vector<8x256xf32> to vector<8x256xbf16>
    %c0_17 = arith.constant 0 : index
    %c0_18 = arith.constant 0 : index
    %19 = vector.load %arg10[%c0_17, %c0_18] : memref<256x256xbf16, #tpu.memory_space<vmem>>, vector<256x256xbf16>
    %cst_19 = arith.constant dense<0.000000e+00> : vector<8x256xf32>
    %20 = tpu.matmul %18, %19, %cst_19 {dimension_numbers = #tpu.dot_dimension_numbers<[1], [0], [0], [1], [0, 0, 1, 1], [], []>} : vector<8x256xbf16>, vector<256x256xbf16>, vector<8x256xf32> -> vector<8x256xf32>
    %21 = arith.addf %16, %20 : vector<8x256xf32>
    %c0_20 = arith.constant 0 : index
    %c0_21 = arith.constant 0 : index
    %22 = vector.load %arg5[%c0_20, %c0_21] : memref<8x1536xf32, #tpu.memory_space<vmem>>, vector<8x1536xf32>
    %23 = arith.truncf %22 : vector<8x1536xf32> to vector<8x1536xbf16>
    %c0_22 = arith.constant 0 : index
    %c0_23 = arith.constant 0 : index
    %24 = vector.load %arg11[%c0_22, %c0_23] : memref<1536x256xbf16, #tpu.memory_space<vmem>>, vector<1536x256xbf16>
    %cst_24 = arith.constant dense<0.000000e+00> : vector<8x256xf32>
    %25 = tpu.matmul %23, %24, %cst_24 {dimension_numbers = #tpu.dot_dimension_numbers<[1], [0], [0], [1], [0, 0, 1, 1], [], []>} : vector<8x1536xbf16>, vector<1536x256xbf16>, vector<8x256xf32> -> vector<8x256xf32>
    %26 = arith.addf %21, %25 : vector<8x256xf32>
    %c0_25 = arith.constant 0 : index
    %c0_26 = arith.constant 0 : index
    %27 = vector.load %arg6[%c0_25, %c0_26] : memref<8x8xf32, #tpu.memory_space<vmem>>, vector<8x8xf32>
    %28 = arith.truncf %27 : vector<8x8xf32> to vector<8x8xbf16>
    %c0_27 = arith.constant 0 : index
    %c0_28 = arith.constant 0 : index
    %29 = vector.load %arg12[%c0_27, %c0_28] : memref<8x256xbf16, #tpu.memory_space<vmem>>, vector<8x256xbf16>
    %cst_29 = arith.constant dense<0.000000e+00> : vector<8x256xf32>
    %30 = tpu.matmul %28, %29, %cst_29 {dimension_numbers = #tpu.dot_dimension_numbers<[1], [0], [0], [1], [0, 0, 1, 1], [], []>} : vector<8x8xbf16>, vector<8x256xbf16>, vector<8x256xf32> -> vector<8x256xf32>
    %31 = arith.addf %26, %30 : vector<8x256xf32>
    %c0_30 = arith.constant 0 : index
    %c0_31 = arith.constant 0 : index
    %32 = vector.load %arg14[%c0_30, %c0_31] : memref<8x256xf32, #tpu.memory_space<vmem>>, vector<8x256xf32>
    tpu.vector_store %arg14[%c0_30, %c0_31], %31 {strides = array<i32>} : memref<8x256xf32, #tpu.memory_space<vmem>>, vector<8x256xf32>,
    return
  }
  func.func @transform_0(%arg0: i32) -> (i32, i32) {
    %c0_i32 = arith.constant 0 : i32
    %c0_i32_0 = arith.constant 0 : i32
    return %arg0, %c0_i32 : i32, i32
  }
  func.func @transform_1(%arg0: i32) -> (i32, i32) {
    %c0_i32 = arith.constant 0 : i32
    %c0_i32_0 = arith.constant 0 : i32
    return %arg0, %c0_i32 : i32, i32
  }
  func.func @transform_2(%arg0: i32) -> (i32, i32) {
    %c0_i32 = arith.constant 0 : i32
    %c0_i32_0 = arith.constant 0 : i32
    return %arg0, %c0_i32 : i32, i32
  }
  func.func @transform_3(%arg0: i32) -> (i32, i32) {
    %c0_i32 = arith.constant 0 : i32
    %c0_i32_0 = arith.constant 0 : i32
    return %arg0, %c0_i32 : i32, i32
  }
  func.func @transform_4(%arg0: i32) -> (i32, i32) {
    %c0_i32 = arith.constant 0 : i32
    %c0_i32_0 = arith.constant 0 : i32
    return %arg0, %c0_i32 : i32, i32
  }
  func.func @transform_5(%arg0: i32) -> (i32, i32) {
    %c0_i32 = arith.constant 0 : i32
    %c0_i32_0 = arith.constant 0 : i32
    return %arg0, %c0_i32 : i32, i32
  }
  func.func @transform_6(%arg0: i32) -> (i32, i32) {
    %c0_i32 = arith.constant 0 : i32
    %c0_i32_0 = arith.constant 0 : i32
    %c0_i32_1 = arith.constant 0 : i32
    return %c0_i32, %c0_i32_0 : i32, i32
  }
  func.func @transform_7(%arg0: i32) -> (i32, i32) {
    %c0_i32 = arith.constant 0 : i32
    %c0_i32_0 = arith.constant 0 : i32
    %c0_i32_1 = arith.constant 0 : i32
    return %c0_i32, %c0_i32_0 : i32, i32
  }
  func.func @transform_8(%arg0: i32) -> (i32, i32) {
    %c0_i32 = arith.constant 0 : i32
    %c0_i32_0 = arith.constant 0 : i32
    %c0_i32_1 = arith.constant 0 : i32
    return %c0_i32, %c0_i32_0 : i32, i32
  }
  func.func @transform_9(%arg0: i32) -> (i32, i32) {
    %c0_i32 = arith.constant 0 : i32
    %c0_i32_0 = arith.constant 0 : i32
    %c0_i32_1 = arith.constant 0 : i32
    return %c0_i32, %c0_i32_0 : i32, i32
  }
  func.func @transform_10(%arg0: i32) -> (i32, i32) {
    %c0_i32 = arith.constant 0 : i32
    %c0_i32_0 = arith.constant 0 : i32
    %c0_i32_1 = arith.constant 0 : i32
    return %c0_i32, %c0_i32_0 : i32, i32
  }
  func.func @transform_11(%arg0: i32) -> (i32, i32) {
    %c0_i32 = arith.constant 0 : i32
    %c0_i32_0 = arith.constant 0 : i32
    %c0_i32_1 = arith.constant 0 : i32
    return %c0_i32, %c0_i32_0 : i32, i32
  }
  func.func @transform_12(%arg0: i32) -> (i32, i32) {
    %c0_i32 = arith.constant 0 : i32
    %c0_i32_0 = arith.constant 0 : i32
    %c0_i32_1 = arith.constant 0 : i32
    return %c0_i32, %c0_i32_0 : i32, i32
  }
  func.func @transform_13(%arg0: i32) -> (i32, i32) {
    %c0_i32 = arith.constant 0 : i32
    %c0_i32_0 = arith.constant 0 : i32
    return %arg0, %c0_i32 : i32, i32
  }
}

</mosaic_0001>

<bundles_post_ra>
// kernel: tpu_custom_call.1
= control target key start
LH: loop header
LB: loop body
LE: loop exit
PB: predicated region body
PF: predicated region fallthrough
CT: control target
= control target key end

     0   :  { %s6559_s0 = inlined_call_operand.hbm [shape: f32[16,768], index: 0, kind: input, shape index: {}]   ;;  %s6560_s1 = inlined_call_operand.hbm [shape: f32[16,256], index: 1, kind: input, shape index: {}]   ;;  %s6561_s2 = inlined_call_operand.hbm [shape: f32[16,768], index: 2, kind: input, shape index: {}]   ;;  %s6562_s3 = inlined_call_operand.vmem [shape: f32[16,256], index: 3, kind: input, shape index: {}]   ;;  %s6563_s4 = inlined_call_operand.hbm [shape: f32[16,1536], index: 4, kind: input, shape index: {}]   ;;  %s6564_s5 = inlined_call_operand.vmem [shape: f32[16,8], index: 5, kind: input, shape index: {}]   ;;  %s6565_s6 = inlined_call_operand.hbm [shape: bf16[768,256], index: 6, kind: input, shape index: {}]   ;;  %s6566_s7 = inlined_call_operand.hbm [shape: bf16[256,256], index: 7, kind: input, shape index: {}]   ;;  %s6567_s8 = inlined_call_operand.hbm [shape: bf16[768,256], index: 8, kind: input, shape index: {}]   ;;  %s6568_s9 = inlined_call_operand.hbm [shape: bf16[256,256], index: 9, kind: input, shape index: {}]   ;;  %s6569_s10 = inlined_call_operand.hbm [shape: bf16[1536,256], index: 10, kind: input, shape index: {}]   ;;  %s6570_s11 = inlined_call_operand.vmem [shape: bf16[8,256], index: 11, kind: input, shape index: {}]   ;;  %s6571_s12 = inlined_call_operand.vmem [shape: f32[1,256], index: 12, kind: input, shape index: {}]   ;;  %s6572_s13 = inlined_call_operand.hbm [shape: f32[16,256], index: 13, kind: output, shape index: {}]  }
   0x1   :  { %6593 = sst [smem:[#allocation29_spill]] %s6560_s1 }
   0x2   :  { %6594 = sst [smem:[#allocation30_spill]] %s6562_s3 }
   0x3   :  { %6595 = sst [smem:[#allocation31_spill]] %s6564_s5 }
   0x4   :  { %6596 = sst [smem:[#allocation32_spill]] %s6565_s6 }
   0x5   :  { %6597 = sst [smem:[#allocation33_spill]] %s6566_s7 }
   0x6   :  { %6598 = sst [smem:[#allocation34_spill]] %s6568_s9 }
   0x7   :  { %6599 = sst [smem:[#allocation35_spill]] %s6570_s11 }
   0x8   :  { %6600 = sst [smem:[#allocation36_spill]] %s6571_s12 }
   0x9   :  { %6601 = sst [smem:[#allocation37_spill]] %s6572_s13 }
   0xa   :  { %18 = vsyncpa [#allocation3], 0 }
   0xb   :  { %20 = vsyncpa [#allocation3 + $0x1], 0 }
   0xc   :  { %21 = vsyncpa [#allocation6], 0 }
   0xd   :  { %23 = vsyncpa [#allocation6 + $0x1], 0 }
   0xe   :  { %24 = vsyncpa [#allocation9], 0 }
   0xf   :  { %26 = vsyncpa [#allocation9 + $0x1], 0 }
  0x10   :  { %27 = vsyncpa [#allocation12], 0 }
  0x11   :  { %28 = vsyncpa [#allocation15], 0 }
  0x12   :  { %29 = vsyncpa [#allocation4], 0 }
  0x13   :  { %31 = vsyncpa [#allocation4 + $0x1], 0  ;;  %s6073_s25 = smov 0   ;;  %s6075_s26 = smov 0  }
  0x14   :  { %s6077_s27 = smov 0   ;;  %s6079_s28 = smov 0  }
  0x15 LB: > { %6602 = sst [smem:[#allocation25_spill]] %s5984_s27  ;;  %s5990_s29 = smov [#allocation10]   ;;  %s5988_s28 = sphi %s6079_s28, %s6643_s28   ;;  %s5984_s27 = sphi %s6077_s27, %s6645_s27   ;;  %s5980_s26 = sphi %s6075_s26, %s6647_s26   ;;  %s5976_s25 = sphi %s6073_s25, %s6646_s25  }
  0x16   : > { %s383_s30 = sshll.u32 %s5990_s29, 4  ;;  %s6094_s14 = sadd.s32 4294967295, %s5988_s28   ;;  %s6099_s30 = int_to_ptr.vmem [resolvable:$true] %s383_s30 }
  0x17   : > { %p4305_p0 = scmp.ge.s32.totalorder %s5988_s28, 1  ;;  %p6579_p1 = scmp.eq.s32.totalorder %s6094_s14, 0 }
  0x18   : > { %p371_p2 = scmp.lt.s32.totalorder %s5988_s28, 3  ;;  %s5991_s16 = smov [#allocation11]  }
  0x19   : > { %s396_s17 = sshll.u32 %s5991_s16, 4  ;;  %s5992_s19 = smov [#allocation14]   ;;  %s6114_s17 = int_to_ptr.vmem [resolvable:$true] %s396_s17 }
  0x1a   : > { %p6101_p3 = pnand %p4305_p0, %p371_p2  ;;  %s422_s20 = sshll.u32 %s5992_s19, 4  ;;  %s6116_s20 = int_to_ptr.vmem [resolvable:$true] %s422_s20 }
  0x1b   : > { %s6605_s6 = sld [smem:[#allocation32_spill]] }
  0x1c   : > { %s6603_s15 = scalar_select %p6101_p3, 1, 0 }
  0x1d   : > { %p4883_p5 = pneg %p6101_p3 }
  0x1f   : > { %p6110_p6 = pnand %p4883_p5, %p6579_p1 }
  0x21   : > { %s6604_s18 = scalar_select %p6110_p6, 1, 0 }
  0x22   : > { %s5642_s23 = scalar_lea.hbm %s6605_s6, 12288  ;;  %p6126_p8 = pneg %p6110_p6 }
  0x23   : > { %p5643_p7 = scmp.ne.s32.totalorder %s6605_s6, %s5642_s23  ;;  %p5649_p11 = scmp.lt.u32.totalorder %s5642_s23, %s6605_s6 }
  0x24   : > { %s6606_s16 = scalar_select %p6126_p8, 1, 0 }
  0x25   : > { %p5645_p9 = pnand %p6126_p8, %p5643_p7 }
  0x27   : > { %p5646_p10 = pneg %p5645_p9 }
  0x29   : > { %p5651_p12 = pnand %p5649_p11, %p5646_p10 }
  0x2b   : > { %5654 = shalt.err (!%p5651_p12)
}
  0x2c   : > { %s5655_s21 = scalar_lea.vmem %s6099_s30, 12288  ;;  %p5663_p5 = scmp.lt.s32.totalorder %s6099_s30, %s6099_s30 }
  0x2d   : > { %p5656_p13 = scmp.ne.s32.totalorder %s6099_s30, %s5655_s21  ;;  %p5664_p4 = scmp.lt.s32.totalorder %s5655_s21, %s5655_s21 }
  0x2f   : > { %p5658_p0 = pnand %p5656_p13, %p6126_p8  ;;  %p5665_p7 = por %p5664_p4, %p5663_p5 }
  0x31   : > { %p5659_p2 = pneg %p5658_p0 }
  0x33   : > { %p5666_p9 = pnand %p5665_p7, %p5659_p2 }
  0x35   : > { %5669 = shalt.err (!%p5666_p9)
}
  0x36   : > { %s6575_s22 = smov 128   ;;  %s6577_s13 = smov 8  }
  0x37   : > { %4886 = dma.hbm_to_vmem [thread:$0]  (!%p6110_p6), %s6605_s6, 12288, %s6099_s30, [#allocation9], %s6575_s22, %s6575_s22, %s6577_s13  }
  0x38   : > { %s6607_s7 = sld [smem:[#allocation33_spill]] }
  0x3e   : > { %s5670_s21 = scalar_lea.hbm %s6607_s7, 4096 }
  0x3f   : > { %p5671_p4 = scmp.ne.s32.totalorder %s6607_s7, %s5670_s21  ;;  %p5677_p12 = scmp.lt.u32.totalorder %s5670_s21, %s6607_s7 }
  0x41   : > { %p5673_p10 = pnand %p5671_p4, %p6126_p8 }
  0x43   : > { %p5674_p11 = pneg %p5673_p10 }
  0x45   : > { %p5679_p13 = pnand %p5677_p12, %p5674_p11 }
  0x47   : > { %5682 = shalt.err (!%p5679_p13)
}
  0x48   : > { %s5683_s30 = scalar_lea.vmem %s6114_s17, 4096  ;;  %p5691_p7 = scmp.lt.s32.totalorder %s6114_s17, %s6114_s17 }
  0x49   : > { %p5684_p0 = scmp.ne.s32.totalorder %s6114_s17, %s5683_s30  ;;  %p5692_p9 = scmp.lt.s32.totalorder %s5683_s30, %s5683_s30 }
  0x4b   : > { %p5686_p2 = pnand %p5684_p0, %p6126_p8  ;;  %p5693_p4 = por %p5692_p9, %p5691_p7 }
  0x4d   : > { %p5687_p5 = pneg %p5686_p2 }
  0x4f   : > { %p5694_p10 = pnand %p5693_p4, %p5687_p5 }
  0x51   : > { %5697 = shalt.err (!%p5694_p10)
}
  0x52   : > { %4889 = dma.hbm_to_vmem [thread:$0]  (!%p6110_p6), %s6607_s7, 4096, %s6114_s17, [#allocation12], %s6575_s22, %s6575_s22, %s6577_s13  }
  0x53   : > { %s6608_s9 = sld [smem:[#allocation34_spill]] }
  0x59   : > { %s5698_s23 = scalar_lea.hbm %s6608_s9, 4096 }
  0x5a   : > { %p5699_p11 = scmp.ne.s32.totalorder %s6608_s9, %s5698_s23  ;;  %p5705_p0 = scmp.lt.u32.totalorder %s5698_s23, %s6608_s9 }
  0x5c   : > { %p5701_p12 = pnand %p5699_p11, %p6126_p8 }
  0x5e   : > { %p5702_p13 = pneg %p5701_p12 }
  0x60   : > { %p5707_p2 = pnand %p5705_p0, %p5702_p13 }
  0x62   : > { %5710 = shalt.err (!%p5707_p2)
}
  0x63   : > { %s5711_s17 = scalar_lea.vmem %s6116_s20, 4096  ;;  %p5719_p4 = scmp.lt.s32.totalorder %s6116_s20, %s6116_s20 }
  0x64   : > { %p5712_p5 = scmp.ne.s32.totalorder %s6116_s20, %s5711_s17  ;;  %p5720_p10 = scmp.lt.s32.totalorder %s5711_s17, %s5711_s17 }
  0x66   : > { %p5714_p7 = pnand %p5712_p5, %p6126_p8  ;;  %p5721_p11 = por %p5720_p10, %p5719_p4 }
  0x68   : > { %p5715_p9 = pneg %p5714_p7 }
  0x6a   : > { %p5722_p12 = pnand %p5721_p11, %p5715_p9 }
  0x6c   : > { %5725 = shalt.err (!%p5722_p12)
}
  0x6d   : > { %4895 = dma.hbm_to_vmem [thread:$0]  (!%p6110_p6), %s6608_s9, 4096, %s6116_s20, [#allocation15], %s6575_s22, %s6575_s22, %s6577_s13  }
  0x6e   : > { %s4304_s5 = sadd.s32 4294967294, %s5988_s28   ;;  %s6204_s11 = sadd.s32 1, %s5988_s28  }
  0x6f   : > { %6609 = sst [smem:[#allocation26_spill]] %s6204_s11  ;;  %s44_s12 = sadd.s32 1, %s5984_s27 }
  0x70   : > { %s41_s23 = ssub.s32 %s5988_s28, %s6204_s11  ;;  %p51_p13 = scmp.ne.s32.totalorder %s5984_s27, %s5980_s26 }
  0x71   : > { %p42_p0 = scmp.eq.s32.totalorder %s41_s23, 0  ;;  %p52_p2 = scmp.eq.s32.totalorder %s5988_s28, 0 }
  0x72   : > { %p57_p5 = scmp.ne.s32.totalorder %s5980_s26, %s5976_s25  ;;  %p358_p7 = scmp.eq.s32.totalorder %s6094_s14, 1 }
  0x73   : > { %s6216_s24 = scalar_select %p42_p0, %s5984_s27, %s44_s12  }
  0x74   : > { %p53_p9 = por %p52_p2, %p51_p13  ;;  %p6220_p4 = por %p6579_p1, %p57_p5 }
  0x75   : > { %6610 = sst [smem:[#allocation27_spill]] %s6216_s24  ;;  %p6224_p10 = por %p358_p7, %p51_p13 }
  0x76   : > { %s6611_s20 = scalar_select %p6220_p4, 1, 0 }
  0x77   : > { %s6612_s29 = scalar_select %p6224_p10, 1, 0 }
  0x78   : > { %p364_p11 = scmp.eq.s32.totalorder %s4304_s5, 1  ;;  %p4921_p12 = scmp.lt.s32.totalorder %s5988_s28, 2 }
  0x79   : > { %s6230_s19 = sand.u32 1, %s5984_s27   ;;  %s6581_s17 = sand.u32 1, %s5988_s28  }
  0x7a   : > { %p6232_p3 = por %p364_p11, %p57_p5  ;;  %p6237_p0 = pnand %p4921_p12, %p53_p9 }
  0x7b   : > { %s4313_s3 = sshll.u32 %s6230_s19, 4  ;;  %s4786_s12 = sshll.u32 %s5988_s28, 8 }
  0x7c   : > { %s6613_s21 = scalar_select %p6232_p3, 1, 0 }
  0x7d   : > { %s6615_s30 = scalar_select %p6237_p0, 1, 0 }
  0x7e   : > { %6614 = sst [smem:[#allocation28_spill]] %s6613_s21  ;;  %s6616_s1 = sld [smem:[#allocation29_spill]] }
  0x7f   : > { %s478_s13 = scalar_lea.vmem [#allocation5], %s4313_s3  ;;  %s6252_s7 = scalar_lea.sflag [#allocation6], %s6581_s17 }
  0x80   : > { %s486_s6 = sshll.u32 %s478_s13, 4  ;;  %p6258_p2 = pneg %p6237_p0  ;;  %s6248_s6 = int_to_ptr.vmem [resolvable:$true] %s486_s6 }
  0x84   : > { %s6246_s5 = scalar_lea.hbm %s6616_s1, %s4786_s12  ;;  %s5731_s13 = scalar_lea.hbm %s6616_s1, 512 }
  0x85   : > { %s5726_s9 = scalar_lea.hbm %s6246_s5, 256  ;;  %p5732_p9 = scmp.lt.u32.totalorder %s6246_s5, %s6616_s1 }
  0x86   : > { %p5727_p13 = scmp.ne.s32.totalorder %s6246_s5, %s5726_s9  ;;  %p5733_p11 = scmp.lt.u32.totalorder %s5731_s13, %s5726_s9 }
  0x87   : > { %p5735_p1 = scmp.lt.u32.totalorder %s5726_s9, %s6246_s5 }
  0x88   : > { %p5729_p5 = pnand %p6258_p2, %p5727_p13  ;;  %p5734_p12 = por %p5733_p11, %p5732_p9 }
  0x8a   : > { %p5730_p7 = pneg %p5729_p5  ;;  %p5736_p3 = por %p5735_p1, %p5734_p12 }
  0x8c   : > { %p5737_p10 = pnand %p5736_p3, %p5730_p7 }
  0x8e   : > { %5740 = shalt.err (!%p5737_p10)
}
  0x8f   : > { %s5741_s17 = scalar_lea.vmem %s6248_s6, 256  ;;  %s5995_s22 = smov [#allocation5]  }
  0x90   : > { %p5742_p13 = scmp.ne.s32.totalorder %s6248_s6, %s5741_s17  ;;  %s5746_s12 = sshll.u32 %s5995_s22, 4  ;;  %s5747_s12 = int_to_ptr.vmem [resolvable:$false] %s5746_s12 }
  0x91   : > { %s5748_s3 = scalar_lea.vmem %s5747_s12, 512  ;;  %p5749_p6 = scmp.lt.s32.totalorder %s6248_s6, %s5747_s12 }
  0x92   : > { %p5744_p5 = pnand %p5742_p13, %p6258_p2  ;;  %p5750_p8 = scmp.lt.s32.totalorder %s5748_s3, %s5741_s17 }
  0x94   : > { %p5745_p4 = pneg %p5744_p5  ;;  %p5751_p9 = por %p5750_p8, %p5749_p6 }
  0x96   : > { %p5752_p11 = pnand %p5751_p9, %p5745_p4 }
  0x98   : > { %5755 = shalt.err (!%p5752_p11)
}
  0x99   : > { %4905 = dma.hbm_to_vmem [thread:$0]  (!%p6237_p0), %s6246_s5, 256, %s6248_s6, %s6252_s7  }
  0x9a   : > { %s5996_s9 = smov [#allocation13]   ;;  %s5997_s23 = smov [#allocation16]  }
  0x9b   : > { %s409_s13 = sshll.u32 %s5996_s9, 4  ;;  %s435_s1 = sshll.u32 %s5997_s23, 4  ;;  %s410_s13 = int_to_ptr.vmem [resolvable:$true] %s409_s13  ;;  %s6282_s1 = int_to_ptr.vmem [resolvable:$true] %s435_s1 }
  0x9c   : > { %s5756_s17 = scalar_lea.hbm %s6567_s8, 12288  ;;  %p6618_p3 = scmp.ne.s32.totalorder %s6606_s16, 0 }
  0x9d   : > { %p5757_p1 = scmp.ne.s32.totalorder %s6567_s8, %s5756_s17  ;;  %p5763_p4 = scmp.lt.u32.totalorder %s5756_s17, %s6567_s8 }
  0x9f   : > { %p5759_p6 = pnand %p5757_p1, %p6618_p3 }
  0xa1   : > { %p5760_p8 = pneg %p5759_p6 }
  0xa3   : > { %p5765_p10 = pnand %p5763_p4, %p5760_p8 }
  0xa5   : > { %5768 = shalt.err (!%p5765_p10)
}
  0xa6   : > { %s5769_s5 = scalar_lea.vmem %s410_s13, 12288  ;;  %p5777_p5 = scmp.lt.s32.totalorder %s410_s13, %s410_s13 }
  0xa7   : > { %p5770_p7 = scmp.ne.s32.totalorder %s410_s13, %s5769_s5  ;;  %p5778_p9 = scmp.lt.s32.totalorder %s5769_s5, %s5769_s5 }
  0xa9   : > { %p5772_p12 = pnand %p5770_p7, %p6618_p3  ;;  %p5779_p11 = por %p5778_p9, %p5777_p5 }
  0xab   : > { %p5773_p13 = pneg %p5772_p12 }
  0xad   : > { %p5780_p0 = pnand %p5779_p11, %p5773_p13 }
  0xaf   : > { %5783 = shalt.err (!%p5780_p0)
}
  0xb0   : > { %p6619_p1 = scmp.ne.s32.totalorder %s6604_s18, 0  ;;  %s6620_s27 = smov 8  }
  0xb1   : > { %s6621_s9 = smov 128   ;;  %s5784_s17 = scalar_lea.hbm %s6569_s10, 24576 }
  0xb2   : > { %4892 = dma.hbm_to_vmem [thread:$0]  (!%p6619_p1), %s6567_s8, 12288, %s410_s13, [#allocation12], %s6621_s9, %s6621_s9, %s6620_s27  }
  0xb3   : > { %p5785_p6 = scmp.ne.s32.totalorder %s6569_s10, %s5784_s17  ;;  %p5791_p4 = scmp.lt.u32.totalorder %s5784_s17, %s6569_s10 }
  0xb5   : > { %p5787_p0 = pnand %p5785_p6, %p6618_p3 }
  0xb7   : > { %p5788_p8 = pneg %p5787_p0 }
  0xb9   : > { %p5793_p10 = pnand %p5791_p4, %p5788_p8 }
  0xbb   : > { %5796 = shalt.err (!%p5793_p10)
}
  0xbc   : > { %s5797_s13 = scalar_lea.vmem %s6282_s1, 24576  ;;  %p5805_p5 = scmp.lt.s32.totalorder %s6282_s1, %s6282_s1 }
  0xbd   : > { %p5798_p7 = scmp.ne.s32.totalorder %s6282_s1, %s5797_s13  ;;  %p5806_p9 = scmp.lt.s32.totalorder %s5797_s13, %s5797_s13 }
  0xbf   : > { %p5800_p12 = pnand %p5798_p7, %p6618_p3  ;;  %p5807_p11 = por %p5806_p9, %p5805_p5 }
  0xc1   : > { %p5801_p13 = pneg %p5800_p12 }
  0xc3   : > { %p5808_p6 = pnand %p5807_p11, %p5801_p13 }
  0xc5   : > { %5811 = shalt.err (!%p5808_p6)
}
  0xc6   : > { %4898 = dma.hbm_to_vmem [thread:$0]  (!%p6619_p1), %s6569_s10, 24576, %s6282_s1, [#allocation15], %s6621_s9, %s6621_s9, %s6620_s27  }
  0xc7   : > { %s4845_s16 = smul.u32 48, %s6230_s19  ;;  %s456_s27 = scalar_lea.sflag [#allocation3], %s6230_s19 }
  0xc8   : > { %s4846_s23 = smul.u32 768, %s5988_s28  ;;  %s5817_s11 = scalar_lea.hbm %s6559_s0, 1536 }
  0xc9   : > { %s459_s18 = scalar_lea.vmem [#allocation2], %s4845_s16 }
  0xca   : > { %s6336_s17 = scalar_lea.hbm %s6559_s0, %s4846_s23  ;;  %s467_s3 = sshll.u32 %s459_s18, 4  ;;  %s6340_s3 = int_to_ptr.vmem [resolvable:$true] %s467_s3 }
  0xcb   : > { %s6345_s1 = scalar_lea.hbm %s6561_s2, %s4846_s23  ;;  %s5812_s9 = scalar_lea.hbm %s6336_s17, 768 }
  0xcc   : > { %p5813_p3 = scmp.ne.s32.totalorder %s6336_s17, %s5812_s9  ;;  %p5818_p8 = scmp.lt.u32.totalorder %s6336_s17, %s6559_s0 }
  0xcd   : > { %p5819_p4 = scmp.lt.u32.totalorder %s5817_s11, %s5812_s9  ;;  %p5821_p7 = scmp.lt.u32.totalorder %s5812_s9, %s6336_s17 }
  0xce   : > { %p5815_p1 = pnand %p5813_p3, %p6258_p2 }
  0xcf   : > { %p5820_p10 = por %p5819_p4, %p5818_p8 }
  0xd0   : > { %p5816_p0 = pneg %p5815_p1 }
  0xd1   : > { %p5822_p12 = por %p5821_p7, %p5820_p10 }
  0xd3   : > { %p5823_p13 = pnand %p5822_p12, %p5816_p0 }
  0xd5   : > { %5826 = shalt.err (!%p5823_p13)
}
  0xd6   : > { %s5827_s23 = scalar_lea.vmem %s6340_s3, 768  ;;  %s5998_s18 = smov [#allocation2]  }
  0xd7   : > { %p5828_p5 = scmp.ne.s32.totalorder %s6340_s3, %s5827_s23  ;;  %s5832_s6 = sshll.u32 %s5998_s18, 4  ;;  %s5833_s6 = int_to_ptr.vmem [resolvable:$false] %s5832_s6 }
  0xd8   : > { %s5834_s5 = scalar_lea.vmem %s5833_s6, 1536  ;;  %p5835_p6 = scmp.lt.s32.totalorder %s6340_s3, %s5833_s6 }
  0xd9   : > { %p5830_p9 = pnand %p5828_p5, %p6258_p2  ;;  %p5836_p3 = scmp.lt.s32.totalorder %s5834_s5, %s5827_s23 }
  0xdb   : > { %p5831_p11 = pneg %p5830_p9  ;;  %p5837_p1 = por %p5836_p3, %p5835_p6 }
  0xdd   : > { %p5838_p8 = pnand %p5837_p1, %p5831_p11 }
  0xdf   : > { %5841 = shalt.err (!%p5838_p8)
}
  0xe0   : > { %p6622_p0 = scmp.ne.s32.totalorder %s6615_s30, 0  ;;  %s497_s9 = scalar_lea.vmem [#allocation7], %s4845_s16 }
  0xe1   : > { %s505_s13 = sshll.u32 %s497_s9, 4  ;;  %s4849_s21 = smul.u32 96, %s6230_s19  ;;  %s506_s13 = int_to_ptr.vmem [resolvable:$true] %s505_s13 }
  0xe2   : > { %4902 = dma.hbm_to_vmem [thread:$0]  (!%p6622_p0), %s6336_s17, 768, %s6340_s3, %s456_s27  }
  0xe3   : > { %s4850_s11 = smul.u32 1536, %s5988_s28  ;;  %s5842_s22 = scalar_lea.hbm %s6345_s1, 768 }
  0xe4   : > { %p5843_p4 = scmp.ne.s32.totalorder %s6345_s1, %s5842_s22  ;;  %s5847_s18 = scalar_lea.hbm %s6561_s2, 1536 }
  0xe5   : > { %p5848_p12 = scmp.lt.u32.totalorder %s6345_s1, %s6561_s2  ;;  %p5849_p13 = scmp.lt.u32.totalorder %s5847_s18, %s5842_s22 }
  0xe6   : > { %p5845_p10 = pnand %p5843_p4, %p6258_p2  ;;  %p5851_p9 = scmp.lt.u32.totalorder %s5842_s22, %s6345_s1 }
  0xe7   : > { %p5850_p5 = por %p5849_p13, %p5848_p12 }
  0xe8   : > { %p5846_p7 = pneg %p5845_p10 }
  0xe9   : > { %p5852_p11 = por %p5851_p9, %p5850_p5 }
  0xeb   : > { %p5853_p6 = pnand %p5852_p11, %p5846_p7 }
  0xed   : > { %5856 = shalt.err (!%p5853_p6)
}
  0xee   : > { %s5857_s16 = scalar_lea.vmem %s506_s13, 768  ;;  %s5999_s17 = smov [#allocation7]  }
  0xef   : > { %p5858_p3 = scmp.ne.s32.totalorder %s506_s13, %s5857_s16  ;;  %s5862_s3 = sshll.u32 %s5999_s17, 4  ;;  %s5863_s3 = int_to_ptr.vmem [resolvable:$false] %s5862_s3 }
  0xf0   : > { %s5864_s27 = scalar_lea.vmem %s5863_s3, 1536  ;;  %p5865_p4 = scmp.lt.s32.totalorder %s506_s13, %s5863_s3 }
  0xf1   : > { %p5860_p1 = pnand %p5858_p3, %p6258_p2  ;;  %p5866_p10 = scmp.lt.s32.totalorder %s5864_s27, %s5857_s16 }
  0xf3   : > { %p5861_p8 = pneg %p5860_p1  ;;  %p5867_p0 = por %p5866_p10, %p5865_p4 }
  0xf5   : > { %p5868_p12 = pnand %p5867_p0, %p5861_p8 }
  0xf7   : > { %5871 = shalt.err (!%p5868_p12)
}
  0xf8   : > { %p6623_p13 = scmp.ne.s32.totalorder %s6615_s30, 0  ;;  %s6394_s12 = scalar_lea.hbm %s6563_s4, %s4850_s11 }
  0xf9   : > { %s524_s23 = scalar_lea.vmem [#allocation8], %s4849_s21  ;;  %s6624_s6 = sand.u32 1, %s5988_s28  }
  0xfa   : > { %4908 = dma.hbm_to_vmem [thread:$0]  (!%p6623_p13), %s6345_s1, 768, %s506_s13, %s6252_s7  }
  0xfb   : > { %s532_s18 = sshll.u32 %s524_s23, 4  ;;  %s521_s5 = scalar_lea.sflag [#allocation9], %s6624_s6  ;;  %s533_s18 = int_to_ptr.vmem [resolvable:$true] %s532_s18 }
  0xfc   : > { %s5872_s16 = scalar_lea.hbm %s6394_s12, 1536  ;;  %s5877_s13 = scalar_lea.hbm %s6563_s4, 3072 }
  0xfd   : > { %p5873_p0 = scmp.ne.s32.totalorder %s6394_s12, %s5872_s16  ;;  %p5878_p9 = scmp.lt.u32.totalorder %s6394_s12, %s6563_s4 }
  0xfe   : > { %p5879_p11 = scmp.lt.u32.totalorder %s5877_s13, %s5872_s16  ;;  %p5881_p3 = scmp.lt.u32.totalorder %s5872_s16, %s6394_s12 }
  0xff   : > { %p5875_p7 = pnand %p5873_p0, %p6258_p2 }
 0x100   : > { %p5880_p6 = por %p5879_p11, %p5878_p9 }
 0x101   : > { %p5876_p5 = pneg %p5875_p7 }
 0x102   : > { %p5882_p1 = por %p5881_p3, %p5880_p6 }
 0x104   : > { %p5883_p8 = pnand %p5882_p1, %p5876_p5 }
 0x106   : > { %5886 = shalt.err (!%p5883_p8)
}
 0x107   : > { %s5887_s21 = scalar_lea.vmem %s533_s18, 1536  ;;  %s6000_s17 = smov [#allocation8]  }
 0x108   : > { %p5888_p4 = scmp.ne.s32.totalorder %s533_s18, %s5887_s21  ;;  %s5892_s3 = sshll.u32 %s6000_s17, 4  ;;  %s5893_s3 = int_to_ptr.vmem [resolvable:$false] %s5892_s3 }
 0x109   : > { %s5894_s27 = scalar_lea.vmem %s5893_s3, 3072  ;;  %p5895_p0 = scmp.lt.s32.totalorder %s533_s18, %s5893_s3 }
 0x10a   : > { %p5890_p10 = pnand %p5888_p4, %p6258_p2  ;;  %p5896_p7 = scmp.lt.s32.totalorder %s5894_s27, %s5887_s21 }
 0x10c   : > { %p5891_p12 = pneg %p5890_p10  ;;  %p5897_p13 = por %p5896_p7, %p5895_p0 }
 0x10e   : > { %p5898_p9 = pnand %p5897_p13, %p5891_p12 }
 0x110   : > { %5901 = shalt.err (!%p5898_p9)
}
 0x111   : > { %p6625_p11 = scmp.ne.s32.totalorder %s6615_s30, 0  ;;  %p6626_p5 = scmp.ne.s32.totalorder %s6603_s15, 0 }
 0x112   : > { %s6420_s24 = sand.u32 (!%p6626_p5), 1, %s5980_s26   ;;  %p6627_p2 = scmp.ne.s32.totalorder (!%p6626_p5), %s6611_s20, 0 }
 0x113   : > { %4911 = dma.hbm_to_vmem [thread:$0]  (!%p6625_p11), %s6394_s12, 1536, %s533_s18, %s521_s5  }
 0x114   : > { %548 = sbr.rel (%p6626_p5) target bundleno = 993 (0x3e1), region = 72  ;;  %s551_s22 = scalar_lea.sflag (!%p6626_p5), [#allocation3], %s6420_s24 }
 0x115   : > { %s4851_s9 = smul.u32 (!%p6626_p5), 48, %s6420_s24 }
 0x117   : > { %s6424_s23 = scalar_lea.vmem (!%p6626_p5), [#allocation2], %s4851_s9 }
 0x11b   : > { %5947 = dma.done.wait (%p6627_p2), %s551_s22, 768  }
 0x11c   : > { %5949 = vsyncadd (%p6627_p2), %s551_s22, 4294966528  ;;  %s559_s15 = sand.u32 1, %s6094_s14   ;;  %s4319_s30 = sshll.u32 %s6420_s24, 4 }
 0x11d   : > { %s560_s12 = scalar_lea.sflag [#allocation6], %s559_s15  ;;  %s6434_s18 = scalar_lea.vmem [#allocation5], %s4319_s30 }
 0x11e   : > { %5951 = dma.done.wait (%p6627_p2), %s560_s12, 1024  }
 0x11f   : > { %5953 = vsyncadd (%p6627_p2), %s560_s12, 4294966272  ;;  %s4852_s6 = smul.u32 96, %s6420_s24  ;;  %s6441_s5 = scalar_lea.vmem [#allocation7], %s4851_s9 }
 0x120   : > { %s578_s16 = scalar_lea.sflag [#allocation9], %s559_s15 }
 0x121   : > { %s6443_s7 = scalar_lea.vmem [#allocation8], %s4852_s6 }
 0x122   : > { %5955 = dma.done.wait (%p6627_p2), %s578_s16, 1536  }
 0x123   : > { %5957 = vsyncadd (%p6627_p2), %s578_s16, 4294965760  ;;  %p6628_p13 = scmp.eq.s32.totalorder %s6094_s14, 0 }
 0x125   : > { %5959 = dma.done.wait (%p6628_p13), [#allocation9], 12288   ;;  %p6629_p6 = pmov %p6628_p13 }
 0x127   : > { %5961 = vsyncadd (%p6629_p6), [#allocation9], 4294955008  ;;  %p6630_p3 = pmov %p6629_p6 }
 0x129   : > { %5963 = dma.done.wait (%p6630_p3), [#allocation12], 16384   ;;  %p6631_p1 = pmov %p6630_p3 }
 0x12b   : > { %5965 = vsyncadd (%p6631_p1), [#allocation12], 4294950912  ;;  %p6632_p8 = pmov %p6631_p1 }
 0x12c   : > { %p6633_p4 = pmov %p6631_p1 }
 0x12d   : > { %5967 = dma.done.wait (%p6632_p8), [#allocation15], 28672  }
 0x12e   : > { %5969 = vsyncadd (%p6633_p4), [#allocation15], 4294938624  ;;  %v4968_v0 = vld [vmem:[#allocation10 + $0x4] ss:$8 sps:$4 sm:$0xff]   ;;  %v4972_v2 = vld [vmem:[#allocation10] ss:$8 sps:$4 sm:$0xff]  }
 0x12f   : > { %v4970_v1 = vld [vmem:[#allocation14 + $0x4] ss:$8 sps:$4 sm:$0xff]   ;;  %1267 = vmatprep.subr.bf16.mxu1 %v4968_v0  ;;  %v4973_v3 = vld [vmem:[#allocation14] ss:$8 sps:$4 sm:$0xff]   ;;  %v4974_v4 = vld [vmem:[#allocation10 + $0x14] ss:$8 sps:$4 sm:$0xff]  }
 0x130   : > { %2551 = vmatprep.subr.bf16.mxu0 %v4970_v1  ;;  %1268 = vmatpush1.bf16.msra.mxu1 %v4972_v2  ;;  %v4976_v5 = vld [vmem:[#allocation14 + $0x14] ss:$8 sps:$4 sm:$0xff]   ;;  %v4978_v6 = vld [vmem:[#allocation10 + $0x10] ss:$8 sps:$4 sm:$0xff]   ;;  %v4980_v8 = vld [vmem:[#allocation10 + $0x24] ss:$8 sps:$4 sm:$0xff]  }
 0x131   : > { %2552 = vmatpush1.bf16.msra.mxu0 %v4973_v3  ;;  %1269 = vmatprep.subr.bf16.mxu1 %v4974_v4  ;;  %v4979_v7 = vld [vmem:[#allocation14 + $0x10] ss:$8 sps:$4 sm:$0xff]   ;;  %v4982_v9 = vld [vmem:[#allocation14 + $0x24] ss:$8 sps:$4 sm:$0xff]   ;;  %v4984_v10 = vld [vmem:[#allocation10 + $0x20] ss:$8 sps:$4 sm:$0xff]  }
 0x132   : > { %2553 = vmatprep.subr.bf16.mxu0 %v4976_v5  ;;  %v4985_v11 = vld [vmem:[#allocation14 + $0x20] ss:$8 sps:$4 sm:$0xff]   ;;  %v4986_v12 = vld [vmem:[#allocation10 + $0x34] ss:$8 sps:$4 sm:$0xff]   ;;  %v4990_v14 = vld [vmem:[#allocation10 + $0x30] ss:$8 sps:$4 sm:$0xff]  }
 0x133   : > { %v4988_v13 = vld [vmem:[#allocation14 + $0x34] ss:$8 sps:$4 sm:$0xff]   ;;  %v4991_v15 = vld [vmem:[#allocation14 + $0x30] ss:$8 sps:$4 sm:$0xff]   ;;  %v4992_v16 = vld [vmem:[#allocation10 + $0x44] ss:$8 sps:$4 sm:$0xff]  }
 0x134   : > { %1270 = vmatpush1.bf16.msra.mxu1 %v4978_v6  ;;  %v4994_v17 = vld [vmem:[#allocation14 + $0x44] ss:$8 sps:$4 sm:$0xff]   ;;  %v4996_v18 = vld [vmem:[#allocation10 + $0x40] ss:$8 sps:$4 sm:$0xff]   ;;  %v4998_v20 = vld [vmem:[#allocation10 + $0x54] ss:$8 sps:$4 sm:$0xff]  }
 0x135   : > { %2554 = vmatpush1.bf16.msra.mxu0 %v4979_v7  ;;  %1271 = vmatprep.subr.bf16.mxu1 %v4980_v8  ;;  %v4997_v19 = vld [vmem:[#allocation14 + $0x40] ss:$8 sps:$4 sm:$0xff]   ;;  %v5000_v21 = vld [vmem:[#allocation14 + $0x54] ss:$8 sps:$4 sm:$0xff]   ;;  %v5002_v22 = vld [vmem:[#allocation10 + $0x50] ss:$8 sps:$4 sm:$0xff]  }
 0x136   : > { %2555 = vmatprep.subr.bf16.mxu0 %v4982_v9  ;;  %v5003_v23 = vld [vmem:[#allocation14 + $0x50] ss:$8 sps:$4 sm:$0xff]   ;;  %v5004_v24 = vld [vmem:[#allocation10 + $0x64] ss:$8 sps:$4 sm:$0xff]   ;;  %v5008_v26 = vld [vmem:[#allocation10 + $0x60] ss:$8 sps:$4 sm:$0xff]  }
 0x137   : > { %v5006_v25 = vld [vmem:[#allocation14 + $0x64] ss:$8 sps:$4 sm:$0xff]   ;;  %v5009_v27 = vld [vmem:[#allocation14 + $0x60] ss:$8 sps:$4 sm:$0xff]   ;;  %v5010_v28 = vld [vmem:[#allocation10 + $0x74] ss:$8 sps:$4 sm:$0xff]  }
 0x138   : > { %1272 = vmatpush1.bf16.msra.mxu1 %v4984_v10  ;;  %v5012_v29 = vld [vmem:[#allocation14 + $0x74] ss:$8 sps:$4 sm:$0xff]   ;;  %v5014_v30 = vld [vmem:[#allocation10 + $0x70] ss:$8 sps:$4 sm:$0xff]   ;;  %v5016_v32 = vld [vmem:[#allocation10 + $0x84] ss:$8 sps:$4 sm:$0xff]  }
 0x139   : > { %2556 = vmatpush1.bf16.msra.mxu0 %v4985_v11  ;;  %1273 = vmatprep.subr.bf16.mxu1 %v4986_v12  ;;  %v5015_v31 = vld [vmem:[#allocation14 + $0x70] ss:$8 sps:$4 sm:$0xff]   ;;  %v5018_v33 = vld [vmem:[#allocation14 + $0x84] ss:$8 sps:$4 sm:$0xff]   ;;  %p668_p10 = scmp.lt.s32.totalorder %s6094_s14, 1  ;;  %s6634_s19 = sld [smem:[#allocation30_spill]] }
 0x13a   : > { %2557 = vmatprep.subr.bf16.mxu0 %v4988_v13  ;;  %v5020_v34 = vld [vmem:[#allocation10 + $0x80] ss:$8 sps:$4 sm:$0xff]   ;;  %v5022_v36 = vld [vmem:[#allocation10 + $0x94] ss:$8 sps:$4 sm:$0xff]   ;;  %v5026_v38 = vld [vmem:[#allocation10 + $0x90] ss:$8 sps:$4 sm:$0xff]  }
 0x13b   : > { %v5021_v35 = vld [vmem:[#allocation14 + $0x80] ss:$8 sps:$4 sm:$0xff]   ;;  %v5024_v37 = vld [vmem:[#allocation14 + $0x94] ss:$8 sps:$4 sm:$0xff]   ;;  %s6463_s20 = scalar_select %p668_p10, %s6094_s14, 1  ;;  %vm4030_vm0 = vcmask 1043456  }
 0x13c   : > { %1274 = vmatpush1.bf16.msra.mxu1 %v4990_v14  ;;  %v5027_v39 = vld [vmem:[#allocation14 + $0x90] ss:$8 sps:$4 sm:$0xff]   ;;  %v5028_v40 = vld [vmem:[#allocation10 + $0xa4] ss:$8 sps:$4 sm:$0xff]   ;;  %v5032_v42 = vld [vmem:[#allocation10 + $0xa0] ss:$8 sps:$4 sm:$0xff]  }
 0x13d   : > { %2558 = vmatpush1.bf16.msra.mxu0 %v4991_v15  ;;  %1275 = vmatprep.subr.bf16.mxu1 %v4992_v16  ;;  %v5030_v41 = vld [vmem:[#allocation14 + $0xa4] ss:$8 sps:$4 sm:$0xff]   ;;  %s4787_s1 = sshll.u32 %s6463_s20, 4  ;;  %v5033_v43 = vld [vmem:[#allocation14 + $0xa0] ss:$8 sps:$4 sm:$0xff]   ;;  %s6635_s27 = sld [smem:[#allocation35_spill]] }
 0x13e   : > { %2559 = vmatprep.subr.bf16.mxu0 %v4994_v17  ;;  %v5034_v44 = vld [vmem:[#allocation10 + $0xb4] ss:$8 sps:$4 sm:$0xff]   ;;  %v5038_v47 = vld [vmem:[#allocation10 + $0xb0] ss:$8 sps:$4 sm:$0xff]   ;;  %v5040_v50 = vld [vmem:[#allocation10 + $0xc4] ss:$8 sps:$4 sm:$0xff]  }
 0x13f   : > { %v5036_v45 = vld [vmem:[#allocation14 + $0xb4] ss:$8 sps:$4 sm:$0xff]   ;;  %s6469_s21 = scalar_lea.vmem %s6634_s19, %s4787_s1  ;;  %v5039_v49 = vld [vmem:[#allocation14 + $0xb0] ss:$8 sps:$4 sm:$0xff]   ;;  %v5042_v52 = vld [vmem:[#allocation14 + $0xc4] ss:$8 sps:$4 sm:$0xff]  }
 0x140   : > { %1276 = vmatpush1.bf16.msra.mxu1 %v4996_v18  ;;  %v680_v46 = vld [vmem:[%s6424_s23 + $0x8] sm:$0xff]  ;;  %v2355_v4 = vld [vmem:[%s6469_s21] sm:$0xff]  ;;  %s4328_s9 = sshll.u32 %s6463_s20, 3  ;;  %s6636_s15 = sld [smem:[#allocation31_spill]]  ;;  %vm4026_vm1 = vcmask 64512  }
 0x141   : > { %2560 = vmatpush1.bf16.msra.mxu0 %v4997_v19  ;;  %1277 = vmatprep.subr.bf16.mxu1 %v4998_v20  ;;  %v686_v48 = vpack.c.bf16 %v680_v46, %v680_v46  ;;  %v2356_v51 = vld [vmem:[%s6469_s21 + $0x8] sm:$0xff]  ;;  %v5046_v56 = vld [vmem:[#allocation10 + $0xd4] ss:$8 sps:$4 sm:$0xff]   ;;  %v5050_v58 = vld [vmem:[#allocation10 + $0xd0] ss:$8 sps:$4 sm:$0xff]   ;;  %v2357_v9 = vpack.c.bf16 %v2355_v4, %v2355_v4  ;;  %s4788_s16 = sshll.u32 %s6094_s14, 8 }
 0x142   : > { %2561 = vmatprep.subr.bf16.mxu0 %v5000_v21  ;;  %v2358_v53 = vpack.c.bf16 %v2356_v51, %v2356_v51  ;;  %v5044_v54 = vld [vmem:[#allocation10 + $0xc0] ss:$8 sps:$4 sm:$0xff]   ;;  %v5048_v57 = vld [vmem:[#allocation14 + $0xd4] ss:$8 sps:$4 sm:$0xff]   ;;  %v5051_v59 = vld [vmem:[#allocation14 + $0xd0] ss:$8 sps:$4 sm:$0xff]  }
 0x143   : > { %1299 = vmatprep.mubr.bf16.mxu1 %v686_v48  ;;  %v5045_v55 = vld [vmem:[#allocation14 + $0xc0] ss:$8 sps:$4 sm:$0xff]   ;;  %v5052_v60 = vld [vmem:[#allocation10 + $0xe4] ss:$8 sps:$4 sm:$0xff]   ;;  %v5058_v0 = vld [vmem:[#allocation10 + $0xf4] ss:$8 sps:$4 sm:$0xff]  }
 0x144   : > { %1278 = vmatpush1.bf16.msra.mxu1 %v5002_v22  ;;  %2583 = vmatprep.mubr.bf16.mxu0 %v2358_v53  ;;  %v5054_v61 = vld [vmem:[#allocation14 + $0xe4] ss:$8 sps:$4 sm:$0xff]   ;;  %v5056_v62 = vld [vmem:[#allocation10 + $0xe0] ss:$8 sps:$4 sm:$0xff]   ;;  %v5060_v1 = vld [vmem:[#allocation14 + $0xf4] ss:$8 sps:$4 sm:$0xff]  }
 0x145   : > { %2562 = vmatpush1.bf16.msra.mxu0 %v5003_v23  ;;  %1279 = vmatprep.subr.bf16.mxu1 %v5004_v24  ;;  %v5057_v63 = vld [vmem:[#allocation14 + $0xe0] ss:$8 sps:$4 sm:$0xff]   ;;  %v5062_v2 = vld [vmem:[#allocation10 + $0xf0] ss:$8 sps:$4 sm:$0xff]   ;;  %v5066_v6 = vld [vmem:[#allocation10 + $0x104] ss:$8 sps:$4 sm:$0xff]  }
 0x146   : > { %2563 = vmatprep.subr.bf16.mxu0 %v5006_v25  ;;  %v5063_v3 = vld [vmem:[#allocation14 + $0xf0] ss:$8 sps:$4 sm:$0xff]   ;;  %v5069_v7 = vld [vmem:[#allocation16 + $0x4] ss:$8 sps:$4 sm:$0xff]   ;;  %v5064_v8 = vld [vmem:[#allocation10 + $0x100] ss:$8 sps:$4 sm:$0xff]   ;;  %s676_s12 = scalar_lea.vmem %s6636_s15, %s4328_s9 }
 0x147   : > { %v679_v5 = vld [vmem:[%s6424_s23] sm:$0xff]  ;;  %s6638_s11 = sld [smem:[#allocation37_spill]]  ;;  %s4083_s14 = scalar_lea.sflag [#allocation4], %s6420_s24 }
 0x148   : > { %1280 = vmatpush1.bf16.msra.mxu1 %v5008_v26  ;;  %v685_v10 = vpack.c.bf16 %v679_v5, %v679_v5  ;;  %v5067_v11 = vld [vmem:[#allocation16] ss:$8 sps:$4 sm:$0xff]   ;;  %v5072_v12 = vld [vmem:[#allocation10 + $0x114] ss:$8 sps:$4 sm:$0xff]   ;;  %v5070_v14 = vld [vmem:[#allocation10 + $0x110] ss:$8 sps:$4 sm:$0xff]  }
 0x149   : > { %2564 = vmatpush1.bf16.msra.mxu0 %v5009_v27  ;;  %1281 = vmatprep.subr.bf16.mxu1 %v5010_v28  ;;  %v5075_v13 = vld [vmem:[#allocation16 + $0x14] ss:$8 sps:$4 sm:$0xff]   ;;  %v5073_v15 = vld [vmem:[#allocation16 + $0x10] ss:$8 sps:$4 sm:$0xff]   ;;  %v5078_v16 = vld [vmem:[#allocation10 + $0x124] ss:$8 sps:$4 sm:$0xff]  }
 0x14a   : > { %2565 = vmatprep.subr.bf16.mxu0 %v5012_v29  ;;  %v5081_v17 = vld [vmem:[#allocation16 + $0x24] ss:$8 sps:$4 sm:$0xff]   ;;  %v5076_v18 = vld [vmem:[#allocation10 + $0x120] ss:$8 sps:$4 sm:$0xff]   ;;  %v5084_v20 = vld [vmem:[#allocation10 + $0x134] ss:$8 sps:$4 sm:$0xff]  }
 0x14b   : > { %v5079_v19 = vld [vmem:[#allocation16 + $0x20] ss:$8 sps:$4 sm:$0xff]   ;;  %v5087_v21 = vld [vmem:[#allocation16 + $0x34] ss:$8 sps:$4 sm:$0xff]   ;;  %v5082_v22 = vld [vmem:[#allocation10 + $0x130] ss:$8 sps:$4 sm:$0xff]  }
 0x14c   : > { %1282 = vmatpush1.bf16.msra.mxu1 %v5014_v30  ;;  %v5085_v23 = vld [vmem:[#allocation16 + $0x30] ss:$8 sps:$4 sm:$0xff]   ;;  %v5090_v24 = vld [vmem:[#allocation10 + $0x144] ss:$8 sps:$4 sm:$0xff]   ;;  %v5088_v26 = vld [vmem:[#allocation10 + $0x140] ss:$8 sps:$4 sm:$0xff]  }
 0x14d   : > { %2566 = vmatpush1.bf16.msra.mxu0 %v5015_v31  ;;  %1283 = vmatprep.subr.bf16.mxu1 %v5016_v32  ;;  %v5093_v25 = vld [vmem:[#allocation16 + $0x44] ss:$8 sps:$4 sm:$0xff]   ;;  %v5091_v27 = vld [vmem:[#allocation16 + $0x40] ss:$8 sps:$4 sm:$0xff]   ;;  %v5096_v28 = vld [vmem:[#allocation10 + $0x154] ss:$8 sps:$4 sm:$0xff]   ;;  %s6515_s19 = scalar_lea.hbm %s6638_s11, %s4788_s16 }
 0x14e   : > { %2567 = vmatprep.subr.bf16.mxu0 %v5018_v33  ;;  %v5099_v29 = vld [vmem:[#allocation16 + $0x54] ss:$8 sps:$4 sm:$0xff]   ;;  %v5094_v30 = vld [vmem:[#allocation10 + $0x150] ss:$8 sps:$4 sm:$0xff]   ;;  %v5102_v32 = vld [vmem:[#allocation10 + $0x164] ss:$8 sps:$4 sm:$0xff]  }
 0x14f   : > { %v5097_v31 = vld [vmem:[#allocation16 + $0x50] ss:$8 sps:$4 sm:$0xff]   ;;  %v5105_v33 = vld [vmem:[#allocation16 + $0x64] ss:$8 sps:$4 sm:$0xff]   ;;  %v5112_v46 = vld [vmem:[#allocation10 + $0x180] ss:$8 sps:$4 sm:$0xff]  }
 0x150   : > { %1284 = vmatpush1.bf16.msra.mxu1 %v5020_v34  ;;  %v5100_v34 = vld [vmem:[#allocation10 + $0x160] ss:$8 sps:$4 sm:$0xff]   ;;  %v5120_v48 = vld [vmem:[#allocation10 + $0x194] ss:$8 sps:$4 sm:$0xff]   ;;  %v5121_v51 = vld [vmem:[#allocation16 + $0x90] ss:$8 sps:$4 sm:$0xff]  }
 0x151   : > { %2568 = vmatpush1.bf16.msra.mxu0 %v5021_v35  ;;  %1285 = vmatprep.subr.bf16.mxu1 %v5022_v36  ;;  %v682_v35 = vld [vmem:[%s6424_s23 + $0x18] sm:$0xff]  ;;  %p6639_p0 = scmp.ne.s32.totalorder %s6612_s29, 0  ;;  %s6002_s21 = smov [#allocation17]  }
 0x152   : > { %2569 = vmatprep.subr.bf16.mxu0 %v5024_v37  ;;  %v5103_v36 = vld [vmem:[#allocation16 + $0x60] ss:$8 sps:$4 sm:$0xff]   ;;  %v5108_v37 = vld [vmem:[#allocation10 + $0x174] ss:$8 sps:$4 sm:$0xff]   ;;  %v5129_v53 = vld [vmem:[#allocation16 + $0xa4] ss:$8 sps:$4 sm:$0xff]  }
 0x153   : > { %v5150_v4 = vld [vmem:[#allocation10 + $0x1e4] ss:$8 sps:$4 sm:$0xff]   ;;  %s5906_s17 = sshll.u32 %s6002_s21, 4  ;;  %s5907_s17 = int_to_ptr.vmem [resolvable:$false] %s5906_s17 }
 0x154   : > { %1286 = vmatpush1.bf16.msra.mxu1 %v5026_v38  ;;  %v688_v38 = vpack.c.bf16 %v682_v35, %v682_v35  ;;  %v5153_v5 = vld [vmem:[#allocation16 + $0xe4] ss:$8 sps:$4 sm:$0xff]   ;;  %v5181_v35 = vld [vmem:[#allocation16 + $0x130] ss:$8 sps:$4 sm:$0xff]   ;;  %s5908_s3 = scalar_lea.vmem %s5907_s17, 512 }
 0x155   : > { %2570 = vmatpush1.bf16.msra.mxu0 %v5027_v39  ;;  %1287 = vmatprep.subr.bf16.mxu1 %v5028_v40  ;;  %v2595_v39 = vld [vmem:[%s6443_s7 + $0x8] sm:$0xff]  ;;  %v5111_v40 = vld [vmem:[#allocation16 + $0x74] ss:$8 sps:$4 sm:$0xff]  }
 0x156   : > { %2571 = vmatprep.subr.bf16.mxu0 %v5030_v41  ;;  %v2607_v41 = vpack.c.bf16 %v2595_v39, %v2595_v39  ;;  %v5187_v39 = vld [vmem:[#allocation16 + $0x140] ss:$8 sps:$4 sm:$0xff]  }
 0x158   : > { %1288 = vmatpush1.bf16.msra.mxu1 %v5032_v42  ;;  %v5106_v42 = vld [vmem:[#allocation10 + $0x170] ss:$8 sps:$4 sm:$0xff]  }
 0x159   : > { %2572 = vmatpush1.bf16.msra.mxu0 %v5033_v43  ;;  %1289 = vmatprep.subr.bf16.mxu1 %v5034_v44  ;;  %v5109_v43 = vld [vmem:[#allocation16 + $0x70] ss:$8 sps:$4 sm:$0xff]   ;;  %v5114_v44 = vld [vmem:[#allocation10 + $0x184] ss:$8 sps:$4 sm:$0xff]  }
 0x15a   : > { %2573 = vmatprep.subr.bf16.mxu0 %v5036_v45  ;;  %v5117_v45 = vld [vmem:[#allocation16 + $0x84] ss:$8 sps:$4 sm:$0xff]  }
 0x15c   : > { %1290 = vmatpush1.bf16.msra.mxu1 %v5038_v47  ;;  %v5115_v47 = vld [vmem:[#allocation16 + $0x80] ss:$8 sps:$4 sm:$0xff]  }
 0x15d   : > { %2574 = vmatpush1.bf16.msra.mxu0 %v5039_v49  ;;  %1291 = vmatprep.subr.bf16.mxu1 %v5040_v50  ;;  %v5123_v49 = vld [vmem:[#allocation16 + $0x94] ss:$8 sps:$4 sm:$0xff]   ;;  %v5118_v50 = vld [vmem:[#allocation10 + $0x190] ss:$8 sps:$4 sm:$0xff]  }
 0x15e   : > { %2575 = vmatprep.subr.bf16.mxu0 %v5042_v52  ;;  %v5126_v52 = vld [vmem:[#allocation10 + $0x1a4] ss:$8 sps:$4 sm:$0xff]  }
 0x160   : > { %1292 = vmatpush1.bf16.msra.mxu1 %v5044_v54  ;;  %v5124_v54 = vld [vmem:[#allocation10 + $0x1a0] ss:$8 sps:$4 sm:$0xff]  }
 0x161   : > { %2576 = vmatpush1.bf16.msra.mxu0 %v5045_v55  ;;  %1293 = vmatprep.subr.bf16.mxu1 %v5046_v56  ;;  %v5127_v55 = vld [vmem:[#allocation16 + $0xa0] ss:$8 sps:$4 sm:$0xff]   ;;  %v5132_v56 = vld [vmem:[#allocation10 + $0x1b4] ss:$8 sps:$4 sm:$0xff]  }
 0x162   : > { %2577 = vmatprep.subr.bf16.mxu0 %v5048_v57  ;;  %v5135_v57 = vld [vmem:[#allocation16 + $0xb4] ss:$8 sps:$4 sm:$0xff]  }
 0x164   : > { %1294 = vmatpush1.bf16.msra.mxu1 %v5050_v58  ;;  %v5130_v58 = vld [vmem:[#allocation10 + $0x1b0] ss:$8 sps:$4 sm:$0xff]  }
 0x165   : > { %2578 = vmatpush1.bf16.msra.mxu0 %v5051_v59  ;;  %1295 = vmatprep.subr.bf16.mxu1 %v5052_v60  ;;  %v5133_v59 = vld [vmem:[#allocation16 + $0xb0] ss:$8 sps:$4 sm:$0xff]   ;;  %v5138_v60 = vld [vmem:[#allocation10 + $0x1c4] ss:$8 sps:$4 sm:$0xff]  }
 0x166   : > { %2579 = vmatprep.subr.bf16.mxu0 %v5054_v61  ;;  %v5141_v61 = vld [vmem:[#allocation16 + $0xc4] ss:$8 sps:$4 sm:$0xff]  }
 0x168   : > { %1296 = vmatpush1.bf16.msra.mxu1 %v5056_v62  ;;  %v5136_v62 = vld [vmem:[#allocation10 + $0x1c0] ss:$8 sps:$4 sm:$0xff]  }
 0x169   : > { %2580 = vmatpush1.bf16.msra.mxu0 %v5057_v63  ;;  %1297 = vmatprep.subr.bf16.mxu1 %v5058_v0  ;;  %v5139_v63 = vld [vmem:[#allocation16 + $0xc0] ss:$8 sps:$4 sm:$0xff]   ;;  %v5144_v0 = vld [vmem:[#allocation10 + $0x1d4] ss:$8 sps:$4 sm:$0xff]  }
 0x16a   : > { %2581 = vmatprep.subr.bf16.mxu0 %v5060_v1  ;;  %v5147_v1 = vld [vmem:[#allocation16 + $0xd4] ss:$8 sps:$4 sm:$0xff]  }
 0x16c   : > { %1298 = vmatpush1.bf16.msra.mxu1 %v5062_v2  ;;  %v5142_v2 = vld [vmem:[#allocation10 + $0x1d0] ss:$8 sps:$4 sm:$0xff]  }
 0x16d   : > { %2582 = vmatpush1.bf16.msra.mxu0 %v5063_v3  ;;  %1308 = vmatprep.subr.bf16.mxu1 %v5066_v6  ;;  %v5145_v3 = vld [vmem:[#allocation16 + $0xd0] ss:$8 sps:$4 sm:$0xff]   ;;  %v5148_v6 = vld [vmem:[#allocation10 + $0x1e0] ss:$8 sps:$4 sm:$0xff]  }
 0x16e   : > { %3770 = vmatprep.subr.bf16.mxu0 %v5069_v7  ;;  %v5151_v7 = vld [vmem:[#allocation16 + $0xe0] ss:$8 sps:$4 sm:$0xff]  }
 0x16f   : > { %1300 = vmatmul.mubr.bf16.vlgmr.msra.gmra.mrb[0].mxu1 %v685_v10  ;;  %v5154_v10 = vld [vmem:[#allocation10 + $0x1f0] ss:$8 sps:$4 sm:$0xff]  }
 0x170   : > { %2584 = vmatmul.mubr.bf16.vlgmr.msra.gmra.mrb[0].mxu0 %v2357_v9  ;;  %1309 = vmatpush1.bf16.msra.mxu1 %v5064_v8  ;;  %v5156_v8 = vld [vmem:[#allocation10 + $0x1f4] ss:$8 sps:$4 sm:$0xff]  }
 0x171   : > { %3771 = vmatpush1.bf16.msra.mxu0 %v5067_v11  ;;  %1310 = vmatprep.subr.bf16.mxu1 %v5072_v12  ;;  %v5159_v9 = vld [vmem:[#allocation16 + $0xf4] ss:$8 sps:$4 sm:$0xff]   ;;  %v5157_v11 = vld [vmem:[#allocation16 + $0xf0] ss:$8 sps:$4 sm:$0xff]  }
 0x172   : > { %3772 = vmatprep.subr.bf16.mxu0 %v5075_v13  ;;  %1340 = vmatprep.mubr.bf16.mxu1 %v688_v38  ;;  %v681_v12 = vld [vmem:[%s6424_s23 + $0x10] sm:$0xff] }
 0x173   : > { %3802 = vmatprep.mubr.bf16.mxu0 %v2607_v41  ;;  %v2594_v13 = vld [vmem:[%s6443_s7] sm:$0xff]  ;;  %v5195_v41 = vld [vmem:[#allocation16 + $0x154] ss:$8 sps:$4 sm:$0xff]  }
 0x174   : > { %1311 = vmatpush1.bf16.msra.mxu1 %v5070_v14  ;;  %v5162_v14 = vld [vmem:[#allocation10 + $0x204] ss:$8 sps:$4 sm:$0xff]   ;;  %v5184_v38 = vld [vmem:[#allocation10 + $0x240] ss:$8 sps:$4 sm:$0xff]  }
 0x175   : > { %3773 = vmatpush1.bf16.msra.mxu0 %v5073_v15  ;;  %1312 = vmatprep.subr.bf16.mxu1 %v5078_v16  ;;  %v5165_v15 = vld [vmem:[#allocation16 + $0x104] ss:$8 sps:$4 sm:$0xff]   ;;  %v5160_v16 = vld [vmem:[#allocation10 + $0x200] ss:$8 sps:$4 sm:$0xff]  }
 0x176   : > { %3774 = vmatprep.subr.bf16.mxu0 %v5081_v17  ;;  %v687_v17 = vpack.c.bf16 %v681_v12, %v681_v12  ;;  %v5246_v12 = vld [vmem:[#allocation10 + $0x2e4] ss:$8 sps:$4 sm:$0xff]  }
 0x178   : > { %1313 = vmatpush1.bf16.msra.mxu1 %v5076_v18  ;;  %v2606_v18 = vpack.c.bf16 %v2594_v13, %v2594_v13  ;;  %v5249_v13 = vld [vmem:[#allocation16 + $0x1e4] ss:$8 sps:$4 sm:$0xff]  }
 0x179   : > { %3775 = vmatpush1.bf16.msra.mxu0 %v5079_v19  ;;  %1314 = vmatprep.subr.bf16.mxu1 %v5084_v20  ;;  %v5163_v19 = vld [vmem:[#allocation16 + $0x100] ss:$8 sps:$4 sm:$0xff]   ;;  %v5168_v20 = vld [vmem:[#allocation10 + $0x214] ss:$8 sps:$4 sm:$0xff]  }
 0x17a   : > { %3776 = vmatprep.subr.bf16.mxu0 %v5087_v21  ;;  %v5171_v21 = vld [vmem:[#allocation16 + $0x114] ss:$8 sps:$4 sm:$0xff]  }
 0x17c   : > { %1315 = vmatpush1.bf16.msra.mxu1 %v5082_v22  ;;  %v5166_v22 = vld [vmem:[#allocation10 + $0x210] ss:$8 sps:$4 sm:$0xff]  }
 0x17d   : > { %3777 = vmatpush1.bf16.msra.mxu0 %v5085_v23  ;;  %1316 = vmatprep.subr.bf16.mxu1 %v5090_v24  ;;  %v684_v23 = vld [vmem:[%s6424_s23 + $0x28] sm:$0xff] }
 0x17e   : > { %3778 = vmatprep.subr.bf16.mxu0 %v5093_v25  ;;  %v5169_v24 = vld [vmem:[#allocation16 + $0x110] ss:$8 sps:$4 sm:$0xff]   ;;  %v5174_v25 = vld [vmem:[#allocation10 + $0x224] ss:$8 sps:$4 sm:$0xff]  }
 0x180   : > { %1317 = vmatpush1.bf16.msra.mxu1 %v5088_v26  ;;  %v690_v26 = vpack.c.bf16 %v684_v23, %v684_v23  ;;  %v5261_v23 = vld [vmem:[#allocation16 + $0x204] ss:$8 sps:$4 sm:$0xff]  }
 0x181   : > { %3779 = vmatpush1.bf16.msra.mxu0 %v5091_v27  ;;  %1318 = vmatprep.subr.bf16.mxu1 %v5096_v28  ;;  %v2597_v27 = vld [vmem:[%s6443_s7 + $0x18] sm:$0xff]  ;;  %v5177_v28 = vld [vmem:[#allocation16 + $0x124] ss:$8 sps:$4 sm:$0xff]  }
 0x182   : > { %3780 = vmatprep.subr.bf16.mxu0 %v5099_v29  ;;  %v2609_v29 = vpack.c.bf16 %v2597_v27, %v2597_v27 }
 0x184   : > { %1319 = vmatpush1.bf16.msra.mxu1 %v5094_v30  ;;  %v5172_v30 = vld [vmem:[#allocation10 + $0x220] ss:$8 sps:$4 sm:$0xff]  }
 0x185   : > { %3781 = vmatpush1.bf16.msra.mxu0 %v5097_v31  ;;  %1320 = vmatprep.subr.bf16.mxu1 %v5102_v32  ;;  %v5175_v31 = vld [vmem:[#allocation16 + $0x120] ss:$8 sps:$4 sm:$0xff]   ;;  %v5180_v32 = vld [vmem:[#allocation10 + $0x234] ss:$8 sps:$4 sm:$0xff]  }
 0x186   : > { %3782 = vmatprep.subr.bf16.mxu0 %v5105_v33  ;;  %v5183_v33 = vld [vmem:[#allocation16 + $0x134] ss:$8 sps:$4 sm:$0xff]  }
 0x188   : > { %1321 = vmatpush1.bf16.msra.mxu1 %v5100_v34  ;;  %v5178_v34 = vld [vmem:[#allocation10 + $0x230] ss:$8 sps:$4 sm:$0xff]  }
 0x189   : > { %3783 = vmatpush1.bf16.msra.mxu0 %v5103_v36  ;;  %1322 = vmatprep.subr.bf16.mxu1 %v5108_v37  ;;  %v5186_v36 = vld [vmem:[#allocation10 + $0x244] ss:$8 sps:$4 sm:$0xff]  }
 0x18a   : > { %3784 = vmatprep.subr.bf16.mxu0 %v5111_v40  ;;  %v5189_v37 = vld [vmem:[#allocation16 + $0x144] ss:$8 sps:$4 sm:$0xff]   ;;  %v5192_v40 = vld [vmem:[#allocation10 + $0x254] ss:$8 sps:$4 sm:$0xff]  }
 0x18c   : > { %1323 = vmatpush1.bf16.msra.mxu1 %v5106_v42  ;;  %v5190_v42 = vld [vmem:[#allocation10 + $0x250] ss:$8 sps:$4 sm:$0xff]  }
 0x18d   : > { %3785 = vmatpush1.bf16.msra.mxu0 %v5109_v43  ;;  %1324 = vmatprep.subr.bf16.mxu1 %v5114_v44  ;;  %v5193_v43 = vld [vmem:[#allocation16 + $0x150] ss:$8 sps:$4 sm:$0xff]   ;;  %v5198_v44 = vld [vmem:[#allocation10 + $0x264] ss:$8 sps:$4 sm:$0xff]  }
 0x18e   : > { %3786 = vmatprep.subr.bf16.mxu0 %v5117_v45  ;;  %v5201_v45 = vld [vmem:[#allocation16 + $0x164] ss:$8 sps:$4 sm:$0xff]  }
 0x190   : > { %1325 = vmatpush1.bf16.msra.mxu1 %v5112_v46  ;;  %v5196_v46 = vld [vmem:[#allocation10 + $0x260] ss:$8 sps:$4 sm:$0xff]  }
 0x191   : > { %3787 = vmatpush1.bf16.msra.mxu0 %v5115_v47  ;;  %1326 = vmatprep.subr.bf16.mxu1 %v5120_v48  ;;  %v5199_v47 = vld [vmem:[#allocation16 + $0x160] ss:$8 sps:$4 sm:$0xff]   ;;  %v5204_v48 = vld [vmem:[#allocation10 + $0x274] ss:$8 sps:$4 sm:$0xff]  }
 0x192   : > { %3788 = vmatprep.subr.bf16.mxu0 %v5123_v49  ;;  %v5207_v49 = vld [vmem:[#allocation16 + $0x174] ss:$8 sps:$4 sm:$0xff]  }
 0x194   : > { %1327 = vmatpush1.bf16.msra.mxu1 %v5118_v50  ;;  %v5202_v50 = vld [vmem:[#allocation10 + $0x270] ss:$8 sps:$4 sm:$0xff]  }
 0x195   : > { %3789 = vmatpush1.bf16.msra.mxu0 %v5121_v51  ;;  %1328 = vmatprep.subr.bf16.mxu1 %v5126_v52  ;;  %v5205_v51 = vld [vmem:[#allocation16 + $0x170] ss:$8 sps:$4 sm:$0xff]   ;;  %v5210_v52 = vld [vmem:[#allocation10 + $0x284] ss:$8 sps:$4 sm:$0xff]  }
 0x196   : > { %3790 = vmatprep.subr.bf16.mxu0 %v5129_v53  ;;  %v5213_v53 = vld [vmem:[#allocation16 + $0x184] ss:$8 sps:$4 sm:$0xff]  }
 0x198   : > { %1329 = vmatpush1.bf16.msra.mxu1 %v5124_v54  ;;  %v5208_v54 = vld [vmem:[#allocation10 + $0x280] ss:$8 sps:$4 sm:$0xff]  }
 0x199   : > { %3791 = vmatpush1.bf16.msra.mxu0 %v5127_v55  ;;  %1330 = vmatprep.subr.bf16.mxu1 %v5132_v56  ;;  %v5211_v55 = vld [vmem:[#allocation16 + $0x180] ss:$8 sps:$4 sm:$0xff]   ;;  %v5216_v56 = vld [vmem:[#allocation10 + $0x294] ss:$8 sps:$4 sm:$0xff]  }
 0x19a   : > { %3792 = vmatprep.subr.bf16.mxu0 %v5135_v57  ;;  %v5219_v57 = vld [vmem:[#allocation16 + $0x194] ss:$8 sps:$4 sm:$0xff]  }
 0x19c   : > { %1331 = vmatpush1.bf16.msra.mxu1 %v5130_v58  ;;  %v5214_v58 = vld [vmem:[#allocation10 + $0x290] ss:$8 sps:$4 sm:$0xff]  }
 0x19d   : > { %3793 = vmatpush1.bf16.msra.mxu0 %v5133_v59  ;;  %1332 = vmatprep.subr.bf16.mxu1 %v5138_v60  ;;  %v5217_v59 = vld [vmem:[#allocation16 + $0x190] ss:$8 sps:$4 sm:$0xff]   ;;  %v5222_v60 = vld [vmem:[#allocation10 + $0x2a4] ss:$8 sps:$4 sm:$0xff]  }
 0x19e   : > { %3794 = vmatprep.subr.bf16.mxu0 %v5141_v61  ;;  %v5225_v61 = vld [vmem:[#allocation16 + $0x1a4] ss:$8 sps:$4 sm:$0xff]  }
 0x1a0   : > { %1333 = vmatpush1.bf16.msra.mxu1 %v5136_v62  ;;  %v5220_v62 = vld [vmem:[#allocation10 + $0x2a0] ss:$8 sps:$4 sm:$0xff]  }
 0x1a1   : > { %3795 = vmatpush1.bf16.msra.mxu0 %v5139_v63  ;;  %1334 = vmatprep.subr.bf16.mxu1 %v5144_v0  ;;  %v5223_v63 = vld [vmem:[#allocation16 + $0x1a0] ss:$8 sps:$4 sm:$0xff]   ;;  %v5228_v0 = vld [vmem:[#allocation10 + $0x2b4] ss:$8 sps:$4 sm:$0xff]  }
 0x1a2   : > { %3796 = vmatprep.subr.bf16.mxu0 %v5147_v1  ;;  %v5231_v1 = vld [vmem:[#allocation16 + $0x1b4] ss:$8 sps:$4 sm:$0xff]  }
 0x1a4   : > { %1335 = vmatpush1.bf16.msra.mxu1 %v5142_v2  ;;  %v5226_v2 = vld [vmem:[#allocation10 + $0x2b0] ss:$8 sps:$4 sm:$0xff]  }
 0x1a5   : > { %3797 = vmatpush1.bf16.msra.mxu0 %v5145_v3  ;;  %1336 = vmatprep.subr.bf16.mxu1 %v5150_v4  ;;  %v5229_v3 = vld [vmem:[#allocation16 + $0x1b0] ss:$8 sps:$4 sm:$0xff]   ;;  %v5234_v4 = vld [vmem:[#allocation10 + $0x2c4] ss:$8 sps:$4 sm:$0xff]  }
 0x1a6   : > { %3798 = vmatprep.subr.bf16.mxu0 %v5153_v5  ;;  %v5237_v5 = vld [vmem:[#allocation16 + $0x1c4] ss:$8 sps:$4 sm:$0xff]  }
 0x1a8   : > { %1337 = vmatpush1.bf16.msra.mxu1 %v5148_v6  ;;  %v5232_v6 = vld [vmem:[#allocation10 + $0x2c0] ss:$8 sps:$4 sm:$0xff]  }
 0x1a9   : > { %3799 = vmatpush1.bf16.msra.mxu0 %v5151_v7  ;;  %1338 = vmatprep.subr.bf16.mxu1 %v5156_v8  ;;  %v5235_v7 = vld [vmem:[#allocation16 + $0x1c0] ss:$8 sps:$4 sm:$0xff]   ;;  %v5240_v8 = vld [vmem:[#allocation10 + $0x2d4] ss:$8 sps:$4 sm:$0xff]  }
 0x1aa   : > { %3800 = vmatprep.subr.bf16.mxu0 %v5159_v9  ;;  %v5243_v9 = vld [vmem:[#allocation16 + $0x1d4] ss:$8 sps:$4 sm:$0xff]  }
 0x1ac   : > { %1339 = vmatpush1.bf16.msra.mxu1 %v5154_v10  ;;  %v5238_v10 = vld [vmem:[#allocation10 + $0x2d0] ss:$8 sps:$4 sm:$0xff]  }
 0x1ad   : > { %3801 = vmatpush1.bf16.msra.mxu0 %v5157_v11  ;;  %1349 = vmatprep.subr.bf16.mxu1 %v5162_v14  ;;  %v5241_v11 = vld [vmem:[#allocation16 + $0x1d0] ss:$8 sps:$4 sm:$0xff]   ;;  %v5244_v14 = vld [vmem:[#allocation10 + $0x2e0] ss:$8 sps:$4 sm:$0xff]  }
 0x1ae   : > { %3811 = vmatprep.subr.bf16.mxu0 %v5165_v15  ;;  %v5247_v15 = vld [vmem:[#allocation16 + $0x1e0] ss:$8 sps:$4 sm:$0xff]  }
 0x1af   : > { %1341 = vmatmul.mubr.bf16.vlgmr.msra.gmra.mrb[0].mxu1 %v687_v17  ;;  %v5255_v17 = vld [vmem:[#allocation16 + $0x1f4] ss:$8 sps:$4 sm:$0xff]  }
 0x1b0   : > { %3803 = vmatmul.mubr.bf16.vlgmr.msra.gmra.mrb[0].mxu0 %v2606_v18  ;;  %1350 = vmatpush1.bf16.msra.mxu1 %v5160_v16  ;;  %v5252_v16 = vld [vmem:[#allocation10 + $0x2f4] ss:$8 sps:$4 sm:$0xff]   ;;  %v5250_v18 = vld [vmem:[#allocation10 + $0x2f0] ss:$8 sps:$4 sm:$0xff]  }
 0x1b1   : > { %3812 = vmatpush1.bf16.msra.mxu0 %v5163_v19  ;;  %1351 = vmatprep.subr.bf16.mxu1 %v5168_v20  ;;  %v5253_v19 = vld [vmem:[#allocation16 + $0x1f0] ss:$8 sps:$4 sm:$0xff]  }
 0x1b2   : > { %3813 = vmatprep.subr.bf16.mxu0 %v5171_v21  ;;  %1381 = vmatprep.mubr.bf16.mxu1 %v690_v26  ;;  %v683_v20 = vld [vmem:[%s6424_s23 + $0x20] sm:$0xff] }
 0x1b3   : > { %3843 = vmatprep.mubr.bf16.mxu0 %v2609_v29  ;;  %v2596_v21 = vld [vmem:[%s6443_s7 + $0x10] sm:$0xff]  ;;  %v689_v26 = vpack.c.bf16 %v683_v20, %v683_v20  ;;  %v5259_v29 = vld [vmem:[#allocation16 + $0x200] ss:$8 sps:$4 sm:$0xff]   ;;  %v5342_v20 = vld [vmem:[#allocation11 + $0xe4] ss:$8 sps:$4 sm:$0xff]  }
 0x1b4   : > { %1352 = vmatpush1.bf16.msra.mxu1 %v5166_v22  ;;  %v5258_v22 = vld [vmem:[#allocation11 + $0x4] ss:$8 sps:$4 sm:$0xff]   ;;  %v2608_v27 = vpack.c.bf16 %v2596_v21, %v2596_v21 }
 0x1b5   : > { %3814 = vmatpush1.bf16.msra.mxu0 %v5169_v24  ;;  %1353 = vmatprep.subr.bf16.mxu1 %v5174_v25  ;;  %v5256_v24 = vld [vmem:[#allocation11] ss:$8 sps:$4 sm:$0xff]   ;;  %v5345_v21 = vld [vmem:[#allocation16 + $0x2e4] ss:$8 sps:$4 sm:$0xff]  }
 0x1b6   : > { %3815 = vmatprep.subr.bf16.mxu0 %v5177_v28  ;;  %v1404_v25 = vld [vmem:[%s6434_s18 + $0x8] sm:$0xff] }
 0x1b7   : > { %v2599_v28 = vld [vmem:[%s6443_s7 + $0x28] sm:$0xff] }
 0x1b8   : > { %1354 = vmatpush1.bf16.msra.mxu1 %v5172_v30  ;;  %v5264_v30 = vld [vmem:[#allocation11 + $0x14] ss:$8 sps:$4 sm:$0xff]  }
 0x1b9   : > { %3816 = vmatpush1.bf16.msra.mxu0 %v5175_v31  ;;  %1355 = vmatprep.subr.bf16.mxu1 %v5180_v32  ;;  %v5267_v31 = vld [vmem:[#allocation16 + $0x214] ss:$8 sps:$4 sm:$0xff]   ;;  %v1406_v32 = vpack.c.bf16 %v1404_v25, %v1404_v25 }
 0x1ba   : > { %3817 = vmatprep.subr.bf16.mxu0 %v5183_v33  ;;  %v2611_v33 = vpack.c.bf16 %v2599_v28, %v2599_v28  ;;  %v5351_v25 = vld [vmem:[#allocation16 + $0x2f4] ss:$8 sps:$4 sm:$0xff]  }
 0x1bb   : > { %v1403_v28 = vld [vmem:[%s6434_s18] sm:$0xff] }
 0x1bc   : > { %1356 = vmatpush1.bf16.msra.mxu1 %v5178_v34  ;;  %v5262_v34 = vld [vmem:[#allocation11 + $0x10] ss:$8 sps:$4 sm:$0xff]  }
 0x1bd   : > { %3818 = vmatpush1.bf16.msra.mxu0 %v5181_v35  ;;  %1357 = vmatprep.subr.bf16.mxu1 %v5186_v36  ;;  %v5265_v35 = vld [vmem:[#allocation16 + $0x210] ss:$8 sps:$4 sm:$0xff]   ;;  %v5270_v36 = vld [vmem:[#allocation11 + $0x24] ss:$8 sps:$4 sm:$0xff]  }
 0x1be   : > { %3819 = vmatprep.subr.bf16.mxu0 %v5189_v37  ;;  %v5273_v37 = vld [vmem:[#allocation16 + $0x224] ss:$8 sps:$4 sm:$0xff]  }
 0x1c0   : > { %1358 = vmatpush1.bf16.msra.mxu1 %v5184_v38  ;;  %v5268_v38 = vld [vmem:[#allocation11 + $0x20] ss:$8 sps:$4 sm:$0xff]  }
 0x1c1   : > { %3820 = vmatpush1.bf16.msra.mxu0 %v5187_v39  ;;  %1359 = vmatprep.subr.bf16.mxu1 %v5192_v40  ;;  %v5271_v39 = vld [vmem:[#allocation16 + $0x220] ss:$8 sps:$4 sm:$0xff]   ;;  %v5276_v40 = vld [vmem:[#allocation11 + $0x34] ss:$8 sps:$4 sm:$0xff]  }
 0x1c2   : > { %3821 = vmatprep.subr.bf16.mxu0 %v5195_v41  ;;  %v5279_v41 = vld [vmem:[#allocation16 + $0x234] ss:$8 sps:$4 sm:$0xff]  }
 0x1c4   : > { %1360 = vmatpush1.bf16.msra.mxu1 %v5190_v42  ;;  %v5274_v42 = vld [vmem:[#allocation11 + $0x30] ss:$8 sps:$4 sm:$0xff]  }
 0x1c5   : > { %3822 = vmatpush1.bf16.msra.mxu0 %v5193_v43  ;;  %1361 = vmatprep.subr.bf16.mxu1 %v5198_v44  ;;  %v5277_v43 = vld [vmem:[#allocation16 + $0x230] ss:$8 sps:$4 sm:$0xff]   ;;  %v5282_v44 = vld [vmem:[#allocation11 + $0x44] ss:$8 sps:$4 sm:$0xff]  }
 0x1c6   : > { %3823 = vmatprep.subr.bf16.mxu0 %v5201_v45  ;;  %v5285_v45 = vld [vmem:[#allocation16 + $0x244] ss:$8 sps:$4 sm:$0xff]  }
 0x1c8   : > { %1362 = vmatpush1.bf16.msra.mxu1 %v5196_v46  ;;  %v5280_v46 = vld [vmem:[#allocation11 + $0x40] ss:$8 sps:$4 sm:$0xff]  }
 0x1c9   : > { %3824 = vmatpush1.bf16.msra.mxu0 %v5199_v47  ;;  %1363 = vmatprep.subr.bf16.mxu1 %v5204_v48  ;;  %v5283_v47 = vld [vmem:[#allocation16 + $0x240] ss:$8 sps:$4 sm:$0xff]   ;;  %v5288_v48 = vld [vmem:[#allocation11 + $0x54] ss:$8 sps:$4 sm:$0xff]  }
 0x1ca   : > { %3825 = vmatprep.subr.bf16.mxu0 %v5207_v49  ;;  %v5291_v49 = vld [vmem:[#allocation16 + $0x254] ss:$8 sps:$4 sm:$0xff]  }
 0x1cc   : > { %1364 = vmatpush1.bf16.msra.mxu1 %v5202_v50  ;;  %v5286_v50 = vld [vmem:[#allocation11 + $0x50] ss:$8 sps:$4 sm:$0xff]  }
 0x1cd   : > { %3826 = vmatpush1.bf16.msra.mxu0 %v5205_v51  ;;  %1365 = vmatprep.subr.bf16.mxu1 %v5210_v52  ;;  %v5289_v51 = vld [vmem:[#allocation16 + $0x250] ss:$8 sps:$4 sm:$0xff]   ;;  %v5294_v52 = vld [vmem:[#allocation11 + $0x64] ss:$8 sps:$4 sm:$0xff]  }
 0x1ce   : > { %3827 = vmatprep.subr.bf16.mxu0 %v5213_v53  ;;  %v5297_v53 = vld [vmem:[#allocation16 + $0x264] ss:$8 sps:$4 sm:$0xff]  }
 0x1d0   : > { %1366 = vmatpush1.bf16.msra.mxu1 %v5208_v54  ;;  %v5292_v54 = vld [vmem:[#allocation11 + $0x60] ss:$8 sps:$4 sm:$0xff]  }
 0x1d1   : > { %3828 = vmatpush1.bf16.msra.mxu0 %v5211_v55  ;;  %1367 = vmatprep.subr.bf16.mxu1 %v5216_v56  ;;  %v5295_v55 = vld [vmem:[#allocation16 + $0x260] ss:$8 sps:$4 sm:$0xff]   ;;  %v5300_v56 = vld [vmem:[#allocation11 + $0x74] ss:$8 sps:$4 sm:$0xff]  }
 0x1d2   : > { %3829 = vmatprep.subr.bf16.mxu0 %v5219_v57  ;;  %v5303_v57 = vld [vmem:[#allocation16 + $0x274] ss:$8 sps:$4 sm:$0xff]  }
 0x1d4   : > { %1368 = vmatpush1.bf16.msra.mxu1 %v5214_v58  ;;  %v5298_v58 = vld [vmem:[#allocation11 + $0x70] ss:$8 sps:$4 sm:$0xff]  }
 0x1d5   : > { %3830 = vmatpush1.bf16.msra.mxu0 %v5217_v59  ;;  %1369 = vmatprep.subr.bf16.mxu1 %v5222_v60  ;;  %v5301_v59 = vld [vmem:[#allocation16 + $0x270] ss:$8 sps:$4 sm:$0xff]   ;;  %v5306_v60 = vld [vmem:[#allocation11 + $0x84] ss:$8 sps:$4 sm:$0xff]  }
 0x1d6   : > { %3831 = vmatprep.subr.bf16.mxu0 %v5225_v61  ;;  %v5309_v61 = vld [vmem:[#allocation16 + $0x284] ss:$8 sps:$4 sm:$0xff]  }
 0x1d8   : > { %1370 = vmatpush1.bf16.msra.mxu1 %v5220_v62  ;;  %v5304_v62 = vld [vmem:[#allocation11 + $0x80] ss:$8 sps:$4 sm:$0xff]  }
 0x1d9   : > { %3832 = vmatpush1.bf16.msra.mxu0 %v5223_v63  ;;  %1371 = vmatprep.subr.bf16.mxu1 %v5228_v0  ;;  %v5307_v63 = vld [vmem:[#allocation16 + $0x280] ss:$8 sps:$4 sm:$0xff]   ;;  %v5312_v0 = vld [vmem:[#allocation11 + $0x94] ss:$8 sps:$4 sm:$0xff]  }
 0x1da   : > { %3833 = vmatprep.subr.bf16.mxu0 %v5231_v1  ;;  %v5315_v1 = vld [vmem:[#allocation16 + $0x294] ss:$8 sps:$4 sm:$0xff]  }
 0x1dc   : > { %1372 = vmatpush1.bf16.msra.mxu1 %v5226_v2  ;;  %v5310_v2 = vld [vmem:[#allocation11 + $0x90] ss:$8 sps:$4 sm:$0xff]  }
 0x1dd   : > { %3834 = vmatpush1.bf16.msra.mxu0 %v5229_v3  ;;  %1373 = vmatprep.subr.bf16.mxu1 %v5234_v4  ;;  %v5313_v3 = vld [vmem:[#allocation16 + $0x290] ss:$8 sps:$4 sm:$0xff]   ;;  %v5318_v4 = vld [vmem:[#allocation11 + $0xa4] ss:$8 sps:$4 sm:$0xff]  }
 0x1de   : > { %3835 = vmatprep.subr.bf16.mxu0 %v5237_v5  ;;  %v5321_v5 = vld [vmem:[#allocation16 + $0x2a4] ss:$8 sps:$4 sm:$0xff]  }
 0x1e0   : > { %1374 = vmatpush1.bf16.msra.mxu1 %v5232_v6  ;;  %v5316_v6 = vld [vmem:[#allocation11 + $0xa0] ss:$8 sps:$4 sm:$0xff]  }
 0x1e1   : > { %3836 = vmatpush1.bf16.msra.mxu0 %v5235_v7  ;;  %1375 = vmatprep.subr.bf16.mxu1 %v5240_v8  ;;  %v5319_v7 = vld [vmem:[#allocation16 + $0x2a0] ss:$8 sps:$4 sm:$0xff]   ;;  %v5324_v8 = vld [vmem:[#allocation11 + $0xb4] ss:$8 sps:$4 sm:$0xff]  }
 0x1e2   : > { %3837 = vmatprep.subr.bf16.mxu0 %v5243_v9  ;;  %v5327_v9 = vld [vmem:[#allocation16 + $0x2b4] ss:$8 sps:$4 sm:$0xff]  }
 0x1e4   : > { %1376 = vmatpush1.bf16.msra.mxu1 %v5238_v10  ;;  %v5322_v10 = vld [vmem:[#allocation11 + $0xb0] ss:$8 sps:$4 sm:$0xff]  }
 0x1e5   : > { %3838 = vmatpush1.bf16.msra.mxu0 %v5241_v11  ;;  %1377 = vmatprep.subr.bf16.mxu1 %v5246_v12  ;;  %v5325_v11 = vld [vmem:[#allocation16 + $0x2b0] ss:$8 sps:$4 sm:$0xff]   ;;  %v5330_v12 = vld [vmem:[#allocation11 + $0xc4] ss:$8 sps:$4 sm:$0xff]  }
 0x1e6   : > { %3839 = vmatprep.subr.bf16.mxu0 %v5249_v13  ;;  %v5333_v13 = vld [vmem:[#allocation16 + $0x2c4] ss:$8 sps:$4 sm:$0xff]  }
 0x1e8   : > { %1378 = vmatpush1.bf16.msra.mxu1 %v5244_v14  ;;  %v5328_v14 = vld [vmem:[#allocation11 + $0xc0] ss:$8 sps:$4 sm:$0xff]  }
 0x1e9   : > { %3840 = vmatpush1.bf16.msra.mxu0 %v5247_v15  ;;  %1379 = vmatprep.subr.bf16.mxu1 %v5252_v16  ;;  %v5331_v15 = vld [vmem:[#allocation16 + $0x2c0] ss:$8 sps:$4 sm:$0xff]   ;;  %v5336_v16 = vld [vmem:[#allocation11 + $0xd4] ss:$8 sps:$4 sm:$0xff]  }
 0x1ea   : > { %3841 = vmatprep.subr.bf16.mxu0 %v5255_v17  ;;  %v5339_v17 = vld [vmem:[#allocation16 + $0x2d4] ss:$8 sps:$4 sm:$0xff]  }
 0x1ec   : > { %1380 = vmatpush1.bf16.msra.mxu1 %v5250_v18  ;;  %v5334_v18 = vld [vmem:[#allocation11 + $0xd0] ss:$8 sps:$4 sm:$0xff]  }
 0x1ed   : > { %3842 = vmatpush1.bf16.msra.mxu0 %v5253_v19  ;;  %1599 = vmatprep.subr.bf16.mxu1 %v5258_v22  ;;  %v5337_v19 = vld [vmem:[#allocation16 + $0x2d0] ss:$8 sps:$4 sm:$0xff]   ;;  %v5340_v22 = vld [vmem:[#allocation11 + $0xe0] ss:$8 sps:$4 sm:$0xff]  }
 0x1ee   : > { %3852 = vmatprep.subr.bf16.mxu0 %v5261_v23  ;;  %v5343_v23 = vld [vmem:[#allocation16 + $0x2e0] ss:$8 sps:$4 sm:$0xff]  }
 0x1ef   : > { %1382 = vmatmul.mubr.bf16.vlgmr.msra.gmra.mrb[0].mxu1 %v689_v26  ;;  %v5346_v26 = vld [vmem:[#allocation11 + $0xf0] ss:$8 sps:$4 sm:$0xff]  }
 0x1f0   : > { %3844 = vmatmul.mubr.bf16.vlgmr.msra.gmra.mrb[0].mxu0 %v2608_v27  ;;  %1600 = vmatpush1.bf16.msra.mxu1 %v5256_v24  ;;  %v5348_v24 = vld [vmem:[#allocation11 + $0xf4] ss:$8 sps:$4 sm:$0xff]   ;;  %v5349_v27 = vld [vmem:[#allocation16 + $0x2f0] ss:$8 sps:$4 sm:$0xff]  }
 0x1f1   : > { %3853 = vmatpush1.bf16.msra.mxu0 %v5259_v29  ;;  %1601 = vmatprep.subr.bf16.mxu1 %v5264_v30  ;;  %v2598_v29 = vld [vmem:[%s6443_s7 + $0x20] sm:$0xff] }
 0x1f2   : > { %3854 = vmatprep.subr.bf16.mxu0 %v5267_v31  ;;  %1631 = vmatprep.mubr.bf16.mxu1 %v1406_v32  ;;  %v5354_v30 = vld [vmem:[#allocation13 + $0x4] ss:$8 sps:$4 sm:$0xff]   ;;  %v5352_v32 = vld [vmem:[#allocation13] ss:$8 sps:$4 sm:$0xff]  }
 0x1f3   : > { %3884 = vmatprep.mubr.bf16.mxu0 %v2611_v33  ;;  %v5357_v31 = vld [vmem:[#allocation16 + $0x304] ss:$8 sps:$4 sm:$0xff]  }
 0x1f4   : > { %1602 = vmatpush1.bf16.msra.mxu1 %v5262_v34  ;;  %v1643_v33 = vld [vmem:[%s6441_s5 + $0x8] sm:$0xff]  ;;  %v1405_v34 = vpack.c.bf16 %v1403_v28, %v1403_v28 }
 0x1f5   : > { %3855 = vmatpush1.bf16.msra.mxu0 %v5265_v35  ;;  %1603 = vmatprep.subr.bf16.mxu1 %v5270_v36  ;;  %v2610_v35 = vpack.c.bf16 %v2598_v29, %v2598_v29  ;;  %v2601_v36 = vld [vmem:[%s6443_s7 + $0x38] sm:$0xff]  ;;  %v5438_v28 = vld [vmem:[#allocation13 + $0xe4] ss:$8 sps:$4 sm:$0xff]  }
 0x1f6   : > { %3856 = vmatprep.subr.bf16.mxu0 %v5273_v37  ;;  %v5355_v37 = vld [vmem:[#allocation16 + $0x300] ss:$8 sps:$4 sm:$0xff]   ;;  %v5441_v29 = vld [vmem:[#allocation16 + $0x3e4] ss:$8 sps:$4 sm:$0xff]  }
 0x1f8   : > { %1604 = vmatpush1.bf16.msra.mxu1 %v5268_v38  ;;  %v5360_v38 = vld [vmem:[#allocation13 + $0x14] ss:$8 sps:$4 sm:$0xff]  }
 0x1f9   : > { %3857 = vmatpush1.bf16.msra.mxu0 %v5271_v39  ;;  %1605 = vmatprep.subr.bf16.mxu1 %v5276_v40  ;;  %v5363_v39 = vld [vmem:[#allocation16 + $0x314] ss:$8 sps:$4 sm:$0xff]   ;;  %v1649_v40 = vpack.c.bf16 %v1643_v33, %v1643_v33 }
 0x1fa   : > { %3858 = vmatprep.subr.bf16.mxu0 %v5279_v41  ;;  %v2613_v41 = vpack.c.bf16 %v2601_v36, %v2601_v36  ;;  %v5447_v33 = vld [vmem:[#allocation16 + $0x3f4] ss:$8 sps:$4 sm:$0xff]  }
 0x1fb   : > { %v1642_v36 = vld [vmem:[%s6441_s5] sm:$0xff] }
 0x1fc   : > { %1606 = vmatpush1.bf16.msra.mxu1 %v5274_v42  ;;  %v5358_v42 = vld [vmem:[#allocation13 + $0x10] ss:$8 sps:$4 sm:$0xff]  }
 0x1fd   : > { %3859 = vmatpush1.bf16.msra.mxu0 %v5277_v43  ;;  %1607 = vmatprep.subr.bf16.mxu1 %v5282_v44  ;;  %v5361_v43 = vld [vmem:[#allocation16 + $0x310] ss:$8 sps:$4 sm:$0xff]   ;;  %v5366_v44 = vld [vmem:[#allocation13 + $0x24] ss:$8 sps:$4 sm:$0xff]  }
 0x1fe   : > { %3860 = vmatprep.subr.bf16.mxu0 %v5285_v45  ;;  %v5369_v45 = vld [vmem:[#allocation16 + $0x324] ss:$8 sps:$4 sm:$0xff]  }
 0x200   : > { %1608 = vmatpush1.bf16.msra.mxu1 %v5280_v46  ;;  %v5364_v46 = vld [vmem:[#allocation13 + $0x20] ss:$8 sps:$4 sm:$0xff]  }
 0x201   : > { %3861 = vmatpush1.bf16.msra.mxu0 %v5283_v47  ;;  %1609 = vmatprep.subr.bf16.mxu1 %v5288_v48  ;;  %v5367_v47 = vld [vmem:[#allocation16 + $0x320] ss:$8 sps:$4 sm:$0xff]   ;;  %v5372_v48 = vld [vmem:[#allocation13 + $0x34] ss:$8 sps:$4 sm:$0xff]  }
 0x202   : > { %3862 = vmatprep.subr.bf16.mxu0 %v5291_v49  ;;  %v5375_v49 = vld [vmem:[#allocation16 + $0x334] ss:$8 sps:$4 sm:$0xff]  }
 0x204   : > { %1610 = vmatpush1.bf16.msra.mxu1 %v5286_v50  ;;  %v5370_v50 = vld [vmem:[#allocation13 + $0x30] ss:$8 sps:$4 sm:$0xff]  }
 0x205   : > { %3863 = vmatpush1.bf16.msra.mxu0 %v5289_v51  ;;  %1611 = vmatprep.subr.bf16.mxu1 %v5294_v52  ;;  %v5373_v51 = vld [vmem:[#allocation16 + $0x330] ss:$8 sps:$4 sm:$0xff]   ;;  %v5378_v52 = vld [vmem:[#allocation13 + $0x44] ss:$8 sps:$4 sm:$0xff]  }
 0x206   : > { %3864 = vmatprep.subr.bf16.mxu0 %v5297_v53  ;;  %v5381_v53 = vld [vmem:[#allocation16 + $0x344] ss:$8 sps:$4 sm:$0xff]  }
 0x208   : > { %1612 = vmatpush1.bf16.msra.mxu1 %v5292_v54  ;;  %v5376_v54 = vld [vmem:[#allocation13 + $0x40] ss:$8 sps:$4 sm:$0xff]  }
 0x209   : > { %3865 = vmatpush1.bf16.msra.mxu0 %v5295_v55  ;;  %1613 = vmatprep.subr.bf16.mxu1 %v5300_v56  ;;  %v5379_v55 = vld [vmem:[#allocation16 + $0x340] ss:$8 sps:$4 sm:$0xff]   ;;  %v5384_v56 = vld [vmem:[#allocation13 + $0x54] ss:$8 sps:$4 sm:$0xff]  }
 0x20a   : > { %3866 = vmatprep.subr.bf16.mxu0 %v5303_v57  ;;  %v5387_v57 = vld [vmem:[#allocation16 + $0x354] ss:$8 sps:$4 sm:$0xff]  }
 0x20c   : > { %1614 = vmatpush1.bf16.msra.mxu1 %v5298_v58  ;;  %v5382_v58 = vld [vmem:[#allocation13 + $0x50] ss:$8 sps:$4 sm:$0xff]  }
 0x20d   : > { %3867 = vmatpush1.bf16.msra.mxu0 %v5301_v59  ;;  %1615 = vmatprep.subr.bf16.mxu1 %v5306_v60  ;;  %v5385_v59 = vld [vmem:[#allocation16 + $0x350] ss:$8 sps:$4 sm:$0xff]   ;;  %v5390_v60 = vld [vmem:[#allocation13 + $0x64] ss:$8 sps:$4 sm:$0xff]  }
 0x20e   : > { %3868 = vmatprep.subr.bf16.mxu0 %v5309_v61  ;;  %v5393_v61 = vld [vmem:[#allocation16 + $0x364] ss:$8 sps:$4 sm:$0xff]  }
 0x210   : > { %1616 = vmatpush1.bf16.msra.mxu1 %v5304_v62  ;;  %v5388_v62 = vld [vmem:[#allocation13 + $0x60] ss:$8 sps:$4 sm:$0xff]  }
 0x211   : > { %3869 = vmatpush1.bf16.msra.mxu0 %v5307_v63  ;;  %1617 = vmatprep.subr.bf16.mxu1 %v5312_v0  ;;  %v5391_v63 = vld [vmem:[#allocation16 + $0x360] ss:$8 sps:$4 sm:$0xff]   ;;  %v5396_v0 = vld [vmem:[#allocation13 + $0x74] ss:$8 sps:$4 sm:$0xff]  }
 0x212   : > { %3870 = vmatprep.subr.bf16.mxu0 %v5315_v1  ;;  %v5399_v1 = vld [vmem:[#allocation16 + $0x374] ss:$8 sps:$4 sm:$0xff]  }
 0x214   : > { %1618 = vmatpush1.bf16.msra.mxu1 %v5310_v2  ;;  %v5394_v2 = vld [vmem:[#allocation13 + $0x70] ss:$8 sps:$4 sm:$0xff]  }
 0x215   : > { %3871 = vmatpush1.bf16.msra.mxu0 %v5313_v3  ;;  %1619 = vmatprep.subr.bf16.mxu1 %v5318_v4  ;;  %v5397_v3 = vld [vmem:[#allocation16 + $0x370] ss:$8 sps:$4 sm:$0xff]   ;;  %v5402_v4 = vld [vmem:[#allocation13 + $0x84] ss:$8 sps:$4 sm:$0xff]  }
 0x216   : > { %3872 = vmatprep.subr.bf16.mxu0 %v5321_v5  ;;  %v5405_v5 = vld [vmem:[#allocation16 + $0x384] ss:$8 sps:$4 sm:$0xff]  }
 0x218   : > { %1620 = vmatpush1.bf16.msra.mxu1 %v5316_v6  ;;  %v5400_v6 = vld [vmem:[#allocation13 + $0x80] ss:$8 sps:$4 sm:$0xff]  }
 0x219   : > { %3873 = vmatpush1.bf16.msra.mxu0 %v5319_v7  ;;  %1621 = vmatprep.subr.bf16.mxu1 %v5324_v8  ;;  %v5403_v7 = vld [vmem:[#allocation16 + $0x380] ss:$8 sps:$4 sm:$0xff]   ;;  %v5408_v8 = vld [vmem:[#allocation13 + $0x94] ss:$8 sps:$4 sm:$0xff]  }
 0x21a   : > { %3874 = vmatprep.subr.bf16.mxu0 %v5327_v9  ;;  %v5411_v9 = vld [vmem:[#allocation16 + $0x394] ss:$8 sps:$4 sm:$0xff]  }
 0x21c   : > { %1622 = vmatpush1.bf16.msra.mxu1 %v5322_v10  ;;  %v5406_v10 = vld [vmem:[#allocation13 + $0x90] ss:$8 sps:$4 sm:$0xff]  }
 0x21d   : > { %3875 = vmatpush1.bf16.msra.mxu0 %v5325_v11  ;;  %1623 = vmatprep.subr.bf16.mxu1 %v5330_v12  ;;  %v5409_v11 = vld [vmem:[#allocation16 + $0x390] ss:$8 sps:$4 sm:$0xff]   ;;  %v5414_v12 = vld [vmem:[#allocation13 + $0xa4] ss:$8 sps:$4 sm:$0xff]  }
 0x21e   : > { %3876 = vmatprep.subr.bf16.mxu0 %v5333_v13  ;;  %v5417_v13 = vld [vmem:[#allocation16 + $0x3a4] ss:$8 sps:$4 sm:$0xff]  }
 0x220   : > { %1624 = vmatpush1.bf16.msra.mxu1 %v5328_v14  ;;  %v5412_v14 = vld [vmem:[#allocation13 + $0xa0] ss:$8 sps:$4 sm:$0xff]  }
 0x221   : > { %3877 = vmatpush1.bf16.msra.mxu0 %v5331_v15  ;;  %1625 = vmatprep.subr.bf16.mxu1 %v5336_v16  ;;  %v5415_v15 = vld [vmem:[#allocation16 + $0x3a0] ss:$8 sps:$4 sm:$0xff]   ;;  %v5420_v16 = vld [vmem:[#allocation13 + $0xb4] ss:$8 sps:$4 sm:$0xff]  }
 0x222   : > { %3878 = vmatprep.subr.bf16.mxu0 %v5339_v17  ;;  %v5423_v17 = vld [vmem:[#allocation16 + $0x3b4] ss:$8 sps:$4 sm:$0xff]  }
 0x224   : > { %1626 = vmatpush1.bf16.msra.mxu1 %v5334_v18  ;;  %v5418_v18 = vld [vmem:[#allocation13 + $0xb0] ss:$8 sps:$4 sm:$0xff]  }
 0x225   : > { %3879 = vmatpush1.bf16.msra.mxu0 %v5337_v19  ;;  %1627 = vmatprep.subr.bf16.mxu1 %v5342_v20  ;;  %v5421_v19 = vld [vmem:[#allocation16 + $0x3b0] ss:$8 sps:$4 sm:$0xff]   ;;  %v5426_v20 = vld [vmem:[#allocation13 + $0xc4] ss:$8 sps:$4 sm:$0xff]  }
 0x226   : > { %3880 = vmatprep.subr.bf16.mxu0 %v5345_v21  ;;  %v5429_v21 = vld [vmem:[#allocation16 + $0x3c4] ss:$8 sps:$4 sm:$0xff]  }
 0x228   : > { %1628 = vmatpush1.bf16.msra.mxu1 %v5340_v22  ;;  %v5424_v22 = vld [vmem:[#allocation13 + $0xc0] ss:$8 sps:$4 sm:$0xff]  }
 0x229   : > { %3881 = vmatpush1.bf16.msra.mxu0 %v5343_v23  ;;  %1629 = vmatprep.subr.bf16.mxu1 %v5348_v24  ;;  %v5427_v23 = vld [vmem:[#allocation16 + $0x3c0] ss:$8 sps:$4 sm:$0xff]   ;;  %v5432_v24 = vld [vmem:[#allocation13 + $0xd4] ss:$8 sps:$4 sm:$0xff]  }
 0x22a   : > { %3882 = vmatprep.subr.bf16.mxu0 %v5351_v25  ;;  %v5435_v25 = vld [vmem:[#allocation16 + $0x3d4] ss:$8 sps:$4 sm:$0xff]  }
 0x22c   : > { %1630 = vmatpush1.bf16.msra.mxu1 %v5346_v26  ;;  %v5430_v26 = vld [vmem:[#allocation13 + $0xd0] ss:$8 sps:$4 sm:$0xff]  }
 0x22d   : > { %3883 = vmatpush1.bf16.msra.mxu0 %v5349_v27  ;;  %2230 = vmatprep.subr.bf16.mxu1 %v5354_v30  ;;  %v5433_v27 = vld [vmem:[#allocation16 + $0x3d0] ss:$8 sps:$4 sm:$0xff]   ;;  %v5436_v30 = vld [vmem:[#allocation13 + $0xe0] ss:$8 sps:$4 sm:$0xff]  }
 0x22e   : > { %3893 = vmatprep.subr.bf16.mxu0 %v5357_v31  ;;  %v5439_v31 = vld [vmem:[#allocation16 + $0x3e0] ss:$8 sps:$4 sm:$0xff]  }
 0x22f   : > { %1632 = vmatmul.mubr.bf16.vlgmr.msra.gmra.mrb[0].mxu1 %v1405_v34  ;;  %v5442_v34 = vld [vmem:[#allocation13 + $0xf0] ss:$8 sps:$4 sm:$0xff]  }
 0x230   : > { %3885 = vmatmul.mubr.bf16.vlgmr.msra.gmra.mrb[0].mxu0 %v2610_v35  ;;  %2231 = vmatpush1.bf16.msra.mxu1 %v5352_v32  ;;  %v5444_v32 = vld [vmem:[#allocation13 + $0xf4] ss:$8 sps:$4 sm:$0xff]   ;;  %v5445_v35 = vld [vmem:[#allocation16 + $0x3f0] ss:$8 sps:$4 sm:$0xff]  }
 0x231   : > { %3894 = vmatpush1.bf16.msra.mxu0 %v5355_v37  ;;  %2232 = vmatprep.subr.bf16.mxu1 %v5360_v38  ;;  %v2600_v37 = vld [vmem:[%s6443_s7 + $0x30] sm:$0xff]  ;;  %v5450_v38 = vld [vmem:[#allocation13 + $0x104] ss:$8 sps:$4 sm:$0xff]  }
 0x232   : > { %3895 = vmatprep.subr.bf16.mxu0 %v5363_v39  ;;  %2262 = vmatprep.mubr.bf16.mxu1 %v1649_v40  ;;  %v5453_v39 = vld [vmem:[#allocation16 + $0x404] ss:$8 sps:$4 sm:$0xff]   ;;  %v1648_v40 = vpack.c.bf16 %v1642_v36, %v1642_v36 }
 0x233   : > { %3925 = vmatprep.mubr.bf16.mxu0 %v2613_v41  ;;  %v2612_v41 = vpack.c.bf16 %v2600_v37, %v2600_v37  ;;  %v5534_v36 = vld [vmem:[#allocation13 + $0x1e4] ss:$8 sps:$4 sm:$0xff]  }
 0x234   : > { %2233 = vmatpush1.bf16.msra.mxu1 %v5358_v42  ;;  %v1645_v42 = vld [vmem:[%s6441_s5 + $0x18] sm:$0xff] }
 0x235   : > { %3896 = vmatpush1.bf16.msra.mxu0 %v5361_v43  ;;  %2234 = vmatprep.subr.bf16.mxu1 %v5366_v44  ;;  %v2603_v43 = vld [vmem:[%s6443_s7 + $0x48] sm:$0xff] }
 0x236   : > { %3897 = vmatprep.subr.bf16.mxu0 %v5369_v45  ;;  %v5448_v44 = vld [vmem:[#allocation13 + $0x100] ss:$8 sps:$4 sm:$0xff]   ;;  %v5537_v37 = vld [vmem:[#allocation16 + $0x4e4] ss:$8 sps:$4 sm:$0xff]  }
 0x237   : > { %v5451_v45 = vld [vmem:[#allocation16 + $0x400] ss:$8 sps:$4 sm:$0xff]  }
 0x238   : > { %2235 = vmatpush1.bf16.msra.mxu1 %v5364_v46  ;;  %v5456_v46 = vld [vmem:[#allocation13 + $0x114] ss:$8 sps:$4 sm:$0xff]  }
 0x239   : > { %3898 = vmatpush1.bf16.msra.mxu0 %v5367_v47  ;;  %2236 = vmatprep.subr.bf16.mxu1 %v5372_v48  ;;  %v5459_v47 = vld [vmem:[#allocation16 + $0x414] ss:$8 sps:$4 sm:$0xff]   ;;  %v1651_v48 = vpack.c.bf16 %v1645_v42, %v1645_v42  ;;  %v5538_v42 = vld [vmem:[#allocation13 + $0x1f0] ss:$8 sps:$4 sm:$0xff]  }
 0x23a   : > { %3899 = vmatprep.subr.bf16.mxu0 %v5375_v49  ;;  %v2615_v49 = vpack.c.bf16 %v2603_v43, %v2603_v43  ;;  %v5541_v43 = vld [vmem:[#allocation16 + $0x4f0] ss:$8 sps:$4 sm:$0xff]  }
 0x23c   : > { %2237 = vmatpush1.bf16.msra.mxu1 %v5370_v50  ;;  %v5454_v50 = vld [vmem:[#allocation13 + $0x110] ss:$8 sps:$4 sm:$0xff]  }
 0x23d   : > { %3900 = vmatpush1.bf16.msra.mxu0 %v5373_v51  ;;  %2238 = vmatprep.subr.bf16.mxu1 %v5378_v52  ;;  %v5457_v51 = vld [vmem:[#allocation16 + $0x410] ss:$8 sps:$4 sm:$0xff]   ;;  %v5462_v52 = vld [vmem:[#allocation13 + $0x124] ss:$8 sps:$4 sm:$0xff]  }
 0x23e   : > { %3901 = vmatprep.subr.bf16.mxu0 %v5381_v53  ;;  %v5465_v53 = vld [vmem:[#allocation16 + $0x424] ss:$8 sps:$4 sm:$0xff]  }
 0x240   : > { %2239 = vmatpush1.bf16.msra.mxu1 %v5376_v54  ;;  %v5460_v54 = vld [vmem:[#allocation13 + $0x120] ss:$8 sps:$4 sm:$0xff]  }
 0x241   : > { %3902 = vmatpush1.bf16.msra.mxu0 %v5379_v55  ;;  %2240 = vmatprep.subr.bf16.mxu1 %v5384_v56  ;;  %v5463_v55 = vld [vmem:[#allocation16 + $0x420] ss:$8 sps:$4 sm:$0xff]   ;;  %v5468_v56 = vld [vmem:[#allocation13 + $0x134] ss:$8 sps:$4 sm:$0xff]  }
 0x242   : > { %3903 = vmatprep.subr.bf16.mxu0 %v5387_v57  ;;  %v5471_v57 = vld [vmem:[#allocation16 + $0x434] ss:$8 sps:$4 sm:$0xff]  }
 0x244   : > { %2241 = vmatpush1.bf16.msra.mxu1 %v5382_v58  ;;  %v5466_v58 = vld [vmem:[#allocation13 + $0x130] ss:$8 sps:$4 sm:$0xff]  }
 0x245   : > { %3904 = vmatpush1.bf16.msra.mxu0 %v5385_v59  ;;  %2242 = vmatprep.subr.bf16.mxu1 %v5390_v60  ;;  %v5469_v59 = vld [vmem:[#allocation16 + $0x430] ss:$8 sps:$4 sm:$0xff]   ;;  %v5474_v60 = vld [vmem:[#allocation13 + $0x144] ss:$8 sps:$4 sm:$0xff]  }
 0x246   : > { %3905 = vmatprep.subr.bf16.mxu0 %v5393_v61  ;;  %v5477_v61 = vld [vmem:[#allocation16 + $0x444] ss:$8 sps:$4 sm:$0xff]  }
 0x248   : > { %2243 = vmatpush1.bf16.msra.mxu1 %v5388_v62  ;;  %v5472_v62 = vld [vmem:[#allocation13 + $0x140] ss:$8 sps:$4 sm:$0xff]  }
 0x249   : > { %3906 = vmatpush1.bf16.msra.mxu0 %v5391_v63  ;;  %2244 = vmatprep.subr.bf16.mxu1 %v5396_v0  ;;  %v5475_v63 = vld [vmem:[#allocation16 + $0x440] ss:$8 sps:$4 sm:$0xff]   ;;  %v5480_v0 = vld [vmem:[#allocation13 + $0x154] ss:$8 sps:$4 sm:$0xff]  }
 0x24a   : > { %3907 = vmatprep.subr.bf16.mxu0 %v5399_v1  ;;  %v5483_v1 = vld [vmem:[#allocation16 + $0x454] ss:$8 sps:$4 sm:$0xff]  }
 0x24c   : > { %2245 = vmatpush1.bf16.msra.mxu1 %v5394_v2  ;;  %v5478_v2 = vld [vmem:[#allocation13 + $0x150] ss:$8 sps:$4 sm:$0xff]  }
 0x24d   : > { %3908 = vmatpush1.bf16.msra.mxu0 %v5397_v3  ;;  %2246 = vmatprep.subr.bf16.mxu1 %v5402_v4  ;;  %v5481_v3 = vld [vmem:[#allocation16 + $0x450] ss:$8 sps:$4 sm:$0xff]   ;;  %v5486_v4 = vld [vmem:[#allocation13 + $0x164] ss:$8 sps:$4 sm:$0xff]  }
 0x24e   : > { %3909 = vmatprep.subr.bf16.mxu0 %v5405_v5  ;;  %v5489_v5 = vld [vmem:[#allocation16 + $0x464] ss:$8 sps:$4 sm:$0xff]  }
 0x250   : > { %2247 = vmatpush1.bf16.msra.mxu1 %v5400_v6  ;;  %v5484_v6 = vld [vmem:[#allocation13 + $0x160] ss:$8 sps:$4 sm:$0xff]  }
 0x251   : > { %3910 = vmatpush1.bf16.msra.mxu0 %v5403_v7  ;;  %2248 = vmatprep.subr.bf16.mxu1 %v5408_v8  ;;  %v5487_v7 = vld [vmem:[#allocation16 + $0x460] ss:$8 sps:$4 sm:$0xff]   ;;  %v5492_v8 = vld [vmem:[#allocation13 + $0x174] ss:$8 sps:$4 sm:$0xff]  }
 0x252   : > { %3911 = vmatprep.subr.bf16.mxu0 %v5411_v9  ;;  %v5495_v9 = vld [vmem:[#allocation16 + $0x474] ss:$8 sps:$4 sm:$0xff]  }
 0x254   : > { %2249 = vmatpush1.bf16.msra.mxu1 %v5406_v10  ;;  %v5490_v10 = vld [vmem:[#allocation13 + $0x170] ss:$8 sps:$4 sm:$0xff]  }
 0x255   : > { %3912 = vmatpush1.bf16.msra.mxu0 %v5409_v11  ;;  %2250 = vmatprep.subr.bf16.mxu1 %v5414_v12  ;;  %v5493_v11 = vld [vmem:[#allocation16 + $0x470] ss:$8 sps:$4 sm:$0xff]   ;;  %v5498_v12 = vld [vmem:[#allocation13 + $0x184] ss:$8 sps:$4 sm:$0xff]  }
 0x256   : > { %3913 = vmatprep.subr.bf16.mxu0 %v5417_v13  ;;  %v5501_v13 = vld [vmem:[#allocation16 + $0x484] ss:$8 sps:$4 sm:$0xff]  }
 0x258   : > { %2251 = vmatpush1.bf16.msra.mxu1 %v5412_v14  ;;  %v5496_v14 = vld [vmem:[#allocation13 + $0x180] ss:$8 sps:$4 sm:$0xff]  }
 0x259   : > { %3914 = vmatpush1.bf16.msra.mxu0 %v5415_v15  ;;  %2252 = vmatprep.subr.bf16.mxu1 %v5420_v16  ;;  %v5499_v15 = vld [vmem:[#allocation16 + $0x480] ss:$8 sps:$4 sm:$0xff]   ;;  %v5504_v16 = vld [vmem:[#allocation13 + $0x194] ss:$8 sps:$4 sm:$0xff]  }
 0x25a   : > { %3915 = vmatprep.subr.bf16.mxu0 %v5423_v17  ;;  %v5507_v17 = vld [vmem:[#allocation16 + $0x494] ss:$8 sps:$4 sm:$0xff]  }
 0x25c   : > { %2253 = vmatpush1.bf16.msra.mxu1 %v5418_v18  ;;  %v5502_v18 = vld [vmem:[#allocation13 + $0x190] ss:$8 sps:$4 sm:$0xff]  }
 0x25d   : > { %3916 = vmatpush1.bf16.msra.mxu0 %v5421_v19  ;;  %2254 = vmatprep.subr.bf16.mxu1 %v5426_v20  ;;  %v5505_v19 = vld [vmem:[#allocation16 + $0x490] ss:$8 sps:$4 sm:$0xff]   ;;  %v5510_v20 = vld [vmem:[#allocation13 + $0x1a4] ss:$8 sps:$4 sm:$0xff]  }
 0x25e   : > { %3917 = vmatprep.subr.bf16.mxu0 %v5429_v21  ;;  %v5513_v21 = vld [vmem:[#allocation16 + $0x4a4] ss:$8 sps:$4 sm:$0xff]  }
 0x260   : > { %2255 = vmatpush1.bf16.msra.mxu1 %v5424_v22  ;;  %v5508_v22 = vld [vmem:[#allocation13 + $0x1a0] ss:$8 sps:$4 sm:$0xff]  }
 0x261   : > { %3918 = vmatpush1.bf16.msra.mxu0 %v5427_v23  ;;  %2256 = vmatprep.subr.bf16.mxu1 %v5432_v24  ;;  %v5511_v23 = vld [vmem:[#allocation16 + $0x4a0] ss:$8 sps:$4 sm:$0xff]   ;;  %v5516_v24 = vld [vmem:[#allocation13 + $0x1b4] ss:$8 sps:$4 sm:$0xff]  }
 0x262   : > { %3919 = vmatprep.subr.bf16.mxu0 %v5435_v25  ;;  %v5519_v25 = vld [vmem:[#allocation16 + $0x4b4] ss:$8 sps:$4 sm:$0xff]  }
 0x264   : > { %2257 = vmatpush1.bf16.msra.mxu1 %v5430_v26  ;;  %v5514_v26 = vld [vmem:[#allocation13 + $0x1b0] ss:$8 sps:$4 sm:$0xff]  }
 0x265   : > { %3920 = vmatpush1.bf16.msra.mxu0 %v5433_v27  ;;  %2258 = vmatprep.subr.bf16.mxu1 %v5438_v28  ;;  %v5517_v27 = vld [vmem:[#allocation16 + $0x4b0] ss:$8 sps:$4 sm:$0xff]   ;;  %v5522_v28 = vld [vmem:[#allocation13 + $0x1c4] ss:$8 sps:$4 sm:$0xff]  }
 0x266   : > { %3921 = vmatprep.subr.bf16.mxu0 %v5441_v29  ;;  %v5525_v29 = vld [vmem:[#allocation16 + $0x4c4] ss:$8 sps:$4 sm:$0xff]  }
 0x268   : > { %2259 = vmatpush1.bf16.msra.mxu1 %v5436_v30  ;;  %v5520_v30 = vld [vmem:[#allocation13 + $0x1c0] ss:$8 sps:$4 sm:$0xff]  }
 0x269   : > { %3922 = vmatpush1.bf16.msra.mxu0 %v5439_v31  ;;  %2260 = vmatprep.subr.bf16.mxu1 %v5444_v32  ;;  %v5523_v31 = vld [vmem:[#allocation16 + $0x4c0] ss:$8 sps:$4 sm:$0xff]   ;;  %v5528_v32 = vld [vmem:[#allocation13 + $0x1d4] ss:$8 sps:$4 sm:$0xff]  }
 0x26a   : > { %3923 = vmatprep.subr.bf16.mxu0 %v5447_v33  ;;  %v5531_v33 = vld [vmem:[#allocation16 + $0x4d4] ss:$8 sps:$4 sm:$0xff]  }
 0x26c   : > { %2261 = vmatpush1.bf16.msra.mxu1 %v5442_v34  ;;  %v5526_v34 = vld [vmem:[#allocation13 + $0x1d0] ss:$8 sps:$4 sm:$0xff]  }
 0x26d   : > { %3924 = vmatpush1.bf16.msra.mxu0 %v5445_v35  ;;  %2271 = vmatprep.subr.bf16.mxu1 %v5450_v38  ;;  %v5529_v35 = vld [vmem:[#allocation16 + $0x4d0] ss:$8 sps:$4 sm:$0xff]   ;;  %v5532_v38 = vld [vmem:[#allocation13 + $0x1e0] ss:$8 sps:$4 sm:$0xff]  }
 0x26e   : > { %3934 = vmatprep.subr.bf16.mxu0 %v5453_v39  ;;  %v5535_v39 = vld [vmem:[#allocation16 + $0x4e0] ss:$8 sps:$4 sm:$0xff]  }
 0x26f   : > { %2263 = vmatmul.mubr.bf16.vlgmr.msra.gmra.mrb[0].mxu1 %v1648_v40  ;;  %v5540_v40 = vld [vmem:[#allocation13 + $0x1f4] ss:$8 sps:$4 sm:$0xff]  }
 0x270   : > { %3926 = vmatmul.mubr.bf16.vlgmr.msra.gmra.mrb[0].mxu0 %v2612_v41  ;;  %2272 = vmatpush1.bf16.msra.mxu1 %v5448_v44  ;;  %v5543_v41 = vld [vmem:[#allocation16 + $0x4f4] ss:$8 sps:$4 sm:$0xff]  }
 0x271   : > { %3935 = vmatpush1.bf16.msra.mxu0 %v5451_v45  ;;  %2273 = vmatprep.subr.bf16.mxu1 %v5456_v46  ;;  %v1644_v44 = vld [vmem:[%s6441_s5 + $0x10] sm:$0xff] }
 0x272   : > { %3936 = vmatprep.subr.bf16.mxu0 %v5459_v47  ;;  %2303 = vmatprep.mubr.bf16.mxu1 %v1651_v48  ;;  %v2602_v45 = vld [vmem:[%s6443_s7 + $0x40] sm:$0xff]  ;;  %v1650_v48 = vpack.c.bf16 %v1644_v44, %v1644_v44 }
 0x273   : > { %3966 = vmatprep.mubr.bf16.mxu0 %v2615_v49  ;;  %v5546_v46 = vld [vmem:[#allocation13 + $0x204] ss:$8 sps:$4 sm:$0xff]   ;;  %v2614_v49 = vpack.c.bf16 %v2602_v45, %v2602_v45 }
 0x274   : > { %2274 = vmatpush1.bf16.msra.mxu1 %v5454_v50  ;;  %v5549_v47 = vld [vmem:[#allocation16 + $0x504] ss:$8 sps:$4 sm:$0xff]  }
 0x275   : > { %3937 = vmatpush1.bf16.msra.mxu0 %v5457_v51  ;;  %2275 = vmatprep.subr.bf16.mxu1 %v5462_v52  ;;  %v1647_v50 = vld [vmem:[%s6441_s5 + $0x28] sm:$0xff] }
 0x276   : > { %3938 = vmatprep.subr.bf16.mxu0 %v5465_v53  ;;  %v2605_v51 = vld [vmem:[%s6443_s7 + $0x58] sm:$0xff]  ;;  %v5544_v52 = vld [vmem:[#allocation13 + $0x200] ss:$8 sps:$4 sm:$0xff]   ;;  %v5630_v44 = vld [vmem:[#allocation13 + $0x2e4] ss:$8 sps:$4 sm:$0xff]  }
 0x277   : > { %v5547_v53 = vld [vmem:[#allocation16 + $0x500] ss:$8 sps:$4 sm:$0xff]   ;;  %v5633_v45 = vld [vmem:[#allocation16 + $0x5e4] ss:$8 sps:$4 sm:$0xff]  }
 0x278   : > { %2276 = vmatpush1.bf16.msra.mxu1 %v5460_v54  ;;  %v5552_v54 = vld [vmem:[#allocation13 + $0x214] ss:$8 sps:$4 sm:$0xff]  }
 0x279   : > { %3939 = vmatpush1.bf16.msra.mxu0 %v5463_v55  ;;  %2277 = vmatprep.subr.bf16.mxu1 %v5468_v56  ;;  %v5555_v55 = vld [vmem:[#allocation16 + $0x514] ss:$8 sps:$4 sm:$0xff]   ;;  %v1653_v56 = vpack.c.bf16 %v1647_v50, %v1647_v50  ;;  %v4020_v50 = vld [vmem:[%s6635_s27] sm:$0xff] }
 0x27a   : > { %3940 = vmatprep.subr.bf16.mxu0 %v5471_v57  ;;  %v2617_v57 = vpack.c.bf16 %v2605_v51, %v2605_v51  ;;  %v5634_v51 = vld [vmem:[#allocation13 + $0x2f0] ss:$8 sps:$4 sm:$0xff]  }
 0x27c   : > { %2278 = vmatpush1.bf16.msra.mxu1 %v5466_v58  ;;  %v5550_v58 = vld [vmem:[#allocation13 + $0x210] ss:$8 sps:$4 sm:$0xff]  }
 0x27d   : > { %3941 = vmatpush1.bf16.msra.mxu0 %v5469_v59  ;;  %2279 = vmatprep.subr.bf16.mxu1 %v5474_v60  ;;  %v5553_v59 = vld [vmem:[#allocation16 + $0x510] ss:$8 sps:$4 sm:$0xff]   ;;  %v5558_v60 = vld [vmem:[#allocation13 + $0x224] ss:$8 sps:$4 sm:$0xff]  }
 0x27e   : > { %3942 = vmatprep.subr.bf16.mxu0 %v5477_v61  ;;  %v5561_v61 = vld [vmem:[#allocation16 + $0x524] ss:$8 sps:$4 sm:$0xff]  }
 0x280   : > { %2280 = vmatpush1.bf16.msra.mxu1 %v5472_v62  ;;  %v5556_v62 = vld [vmem:[#allocation13 + $0x220] ss:$8 sps:$4 sm:$0xff]  }
 0x281   : > { %3943 = vmatpush1.bf16.msra.mxu0 %v5475_v63  ;;  %2281 = vmatprep.subr.bf16.mxu1 %v5480_v0  ;;  %v5559_v63 = vld [vmem:[#allocation16 + $0x520] ss:$8 sps:$4 sm:$0xff]   ;;  %v5564_v0 = vld [vmem:[#allocation13 + $0x234] ss:$8 sps:$4 sm:$0xff]  }
 0x282   : > { %3944 = vmatprep.subr.bf16.mxu0 %v5483_v1  ;;  %v5567_v1 = vld [vmem:[#allocation16 + $0x534] ss:$8 sps:$4 sm:$0xff]  }
 0x284   : > { %2282 = vmatpush1.bf16.msra.mxu1 %v5478_v2  ;;  %v5562_v2 = vld [vmem:[#allocation13 + $0x230] ss:$8 sps:$4 sm:$0xff]  }
 0x285   : > { %3945 = vmatpush1.bf16.msra.mxu0 %v5481_v3  ;;  %2283 = vmatprep.subr.bf16.mxu1 %v5486_v4  ;;  %v5565_v3 = vld [vmem:[#allocation16 + $0x530] ss:$8 sps:$4 sm:$0xff]   ;;  %v5570_v4 = vld [vmem:[#allocation13 + $0x244] ss:$8 sps:$4 sm:$0xff]  }
 0x286   : > { %3946 = vmatprep.subr.bf16.mxu0 %v5489_v5  ;;  %v5573_v5 = vld [vmem:[#allocation16 + $0x544] ss:$8 sps:$4 sm:$0xff]  }
 0x288   : > { %2284 = vmatpush1.bf16.msra.mxu1 %v5484_v6  ;;  %v5568_v6 = vld [vmem:[#allocation13 + $0x240] ss:$8 sps:$4 sm:$0xff]  }
 0x289   : > { %3947 = vmatpush1.bf16.msra.mxu0 %v5487_v7  ;;  %2285 = vmatprep.subr.bf16.mxu1 %v5492_v8  ;;  %v5571_v7 = vld [vmem:[#allocation16 + $0x540] ss:$8 sps:$4 sm:$0xff]   ;;  %v5576_v8 = vld [vmem:[#allocation13 + $0x254] ss:$8 sps:$4 sm:$0xff]  }
 0x28a   : > { %3948 = vmatprep.subr.bf16.mxu0 %v5495_v9  ;;  %v5579_v9 = vld [vmem:[#allocation16 + $0x554] ss:$8 sps:$4 sm:$0xff]  }
 0x28c   : > { %2286 = vmatpush1.bf16.msra.mxu1 %v5490_v10  ;;  %v5574_v10 = vld [vmem:[#allocation13 + $0x250] ss:$8 sps:$4 sm:$0xff]  }
 0x28d   : > { %3949 = vmatpush1.bf16.msra.mxu0 %v5493_v11  ;;  %2287 = vmatprep.subr.bf16.mxu1 %v5498_v12  ;;  %v5577_v11 = vld [vmem:[#allocation16 + $0x550] ss:$8 sps:$4 sm:$0xff]   ;;  %v5582_v12 = vld [vmem:[#allocation13 + $0x264] ss:$8 sps:$4 sm:$0xff]  }
 0x28e   : > { %3950 = vmatprep.subr.bf16.mxu0 %v5501_v13  ;;  %v5585_v13 = vld [vmem:[#allocation16 + $0x564] ss:$8 sps:$4 sm:$0xff]  }
 0x290   : > { %2288 = vmatpush1.bf16.msra.mxu1 %v5496_v14  ;;  %v5580_v14 = vld [vmem:[#allocation13 + $0x260] ss:$8 sps:$4 sm:$0xff]  }
 0x291   : > { %3951 = vmatpush1.bf16.msra.mxu0 %v5499_v15  ;;  %2289 = vmatprep.subr.bf16.mxu1 %v5504_v16  ;;  %v5583_v15 = vld [vmem:[#allocation16 + $0x560] ss:$8 sps:$4 sm:$0xff]   ;;  %v5588_v16 = vld [vmem:[#allocation13 + $0x274] ss:$8 sps:$4 sm:$0xff]  }
 0x292   : > { %3952 = vmatprep.subr.bf16.mxu0 %v5507_v17  ;;  %v5591_v17 = vld [vmem:[#allocation16 + $0x574] ss:$8 sps:$4 sm:$0xff]  }
 0x294   : > { %2290 = vmatpush1.bf16.msra.mxu1 %v5502_v18  ;;  %v5586_v18 = vld [vmem:[#allocation13 + $0x270] ss:$8 sps:$4 sm:$0xff]  }
 0x295   : > { %3953 = vmatpush1.bf16.msra.mxu0 %v5505_v19  ;;  %2291 = vmatprep.subr.bf16.mxu1 %v5510_v20  ;;  %v5589_v19 = vld [vmem:[#allocation16 + $0x570] ss:$8 sps:$4 sm:$0xff]   ;;  %v5594_v20 = vld [vmem:[#allocation13 + $0x284] ss:$8 sps:$4 sm:$0xff]  }
 0x296   : > { %3954 = vmatprep.subr.bf16.mxu0 %v5513_v21  ;;  %v5597_v21 = vld [vmem:[#allocation16 + $0x584] ss:$8 sps:$4 sm:$0xff]  }
 0x298   : > { %2292 = vmatpush1.bf16.msra.mxu1 %v5508_v22  ;;  %v5592_v22 = vld [vmem:[#allocation13 + $0x280] ss:$8 sps:$4 sm:$0xff]  }
 0x299   : > { %3955 = vmatpush1.bf16.msra.mxu0 %v5511_v23  ;;  %2293 = vmatprep.subr.bf16.mxu1 %v5516_v24  ;;  %v5595_v23 = vld [vmem:[#allocation16 + $0x580] ss:$8 sps:$4 sm:$0xff]   ;;  %v5600_v24 = vld [vmem:[#allocation13 + $0x294] ss:$8 sps:$4 sm:$0xff]  }
 0x29a   : > { %3956 = vmatprep.subr.bf16.mxu0 %v5519_v25  ;;  %v5603_v25 = vld [vmem:[#allocation16 + $0x594] ss:$8 sps:$4 sm:$0xff]  }
 0x29c   : > { %2294 = vmatpush1.bf16.msra.mxu1 %v5514_v26  ;;  %v5598_v26 = vld [vmem:[#allocation13 + $0x290] ss:$8 sps:$4 sm:$0xff]  }
 0x29d   : > { %3957 = vmatpush1.bf16.msra.mxu0 %v5517_v27  ;;  %2295 = vmatprep.subr.bf16.mxu1 %v5522_v28  ;;  %v5601_v27 = vld [vmem:[#allocation16 + $0x590] ss:$8 sps:$4 sm:$0xff]   ;;  %v5606_v28 = vld [vmem:[#allocation13 + $0x2a4] ss:$8 sps:$4 sm:$0xff]  }
 0x29e   : > { %3958 = vmatprep.subr.bf16.mxu0 %v5525_v29  ;;  %v5609_v29 = vld [vmem:[#allocation16 + $0x5a4] ss:$8 sps:$4 sm:$0xff]  }
 0x2a0   : > { %2296 = vmatpush1.bf16.msra.mxu1 %v5520_v30  ;;  %v5604_v30 = vld [vmem:[#allocation13 + $0x2a0] ss:$8 sps:$4 sm:$0xff]  }
 0x2a1   : > { %3959 = vmatpush1.bf16.msra.mxu0 %v5523_v31  ;;  %2297 = vmatprep.subr.bf16.mxu1 %v5528_v32  ;;  %v5607_v31 = vld [vmem:[#allocation16 + $0x5a0] ss:$8 sps:$4 sm:$0xff]   ;;  %v5612_v32 = vld [vmem:[#allocation13 + $0x2b4] ss:$8 sps:$4 sm:$0xff]  }
 0x2a2   : > { %3960 = vmatprep.subr.bf16.mxu0 %v5531_v33  ;;  %v5615_v33 = vld [vmem:[#allocation16 + $0x5b4] ss:$8 sps:$4 sm:$0xff]  }
 0x2a4   : > { %2298 = vmatpush1.bf16.msra.mxu1 %v5526_v34  ;;  %v5610_v34 = vld [vmem:[#allocation13 + $0x2b0] ss:$8 sps:$4 sm:$0xff]  }
 0x2a5   : > { %3961 = vmatpush1.bf16.msra.mxu0 %v5529_v35  ;;  %2299 = vmatprep.subr.bf16.mxu1 %v5534_v36  ;;  %v5613_v35 = vld [vmem:[#allocation16 + $0x5b0] ss:$8 sps:$4 sm:$0xff]   ;;  %v5618_v36 = vld [vmem:[#allocation13 + $0x2c4] ss:$8 sps:$4 sm:$0xff]  }
 0x2a6   : > { %3962 = vmatprep.subr.bf16.mxu0 %v5537_v37  ;;  %v5621_v37 = vld [vmem:[#allocation16 + $0x5c4] ss:$8 sps:$4 sm:$0xff]  }
 0x2a8   : > { %2300 = vmatpush1.bf16.msra.mxu1 %v5532_v38  ;;  %v5616_v38 = vld [vmem:[#allocation13 + $0x2c0] ss:$8 sps:$4 sm:$0xff]  }
 0x2a9   : > { %3963 = vmatpush1.bf16.msra.mxu0 %v5535_v39  ;;  %2301 = vmatprep.subr.bf16.mxu1 %v5540_v40  ;;  %v5619_v39 = vld [vmem:[#allocation16 + $0x5c0] ss:$8 sps:$4 sm:$0xff]   ;;  %v5624_v40 = vld [vmem:[#allocation13 + $0x2d4] ss:$8 sps:$4 sm:$0xff]  }
 0x2aa   : > { %3964 = vmatprep.subr.bf16.mxu0 %v5543_v41  ;;  %v5627_v41 = vld [vmem:[#allocation16 + $0x5d4] ss:$8 sps:$4 sm:$0xff]  }
 0x2ac   : > { %2302 = vmatpush1.bf16.msra.mxu1 %v5538_v42  ;;  %v5622_v42 = vld [vmem:[#allocation13 + $0x2d0] ss:$8 sps:$4 sm:$0xff]  }
 0x2ad   : > { %3965 = vmatpush1.bf16.msra.mxu0 %v5541_v43  ;;  %2312 = vmatprep.subr.bf16.mxu1 %v5546_v46  ;;  %v5625_v43 = vld [vmem:[#allocation16 + $0x5d0] ss:$8 sps:$4 sm:$0xff]   ;;  %v5628_v46 = vld [vmem:[#allocation13 + $0x2e0] ss:$8 sps:$4 sm:$0xff]  }
 0x2ae   : > { %3975 = vmatprep.subr.bf16.mxu0 %v5549_v47  ;;  %v5631_v47 = vld [vmem:[#allocation16 + $0x5e0] ss:$8 sps:$4 sm:$0xff]  }
 0x2af   : > { %2304 = vmatmul.mubr.bf16.vlgmr.msra.gmra.mrb[0].mxu1 %v1650_v48  ;;  %v5636_v48 = vld [vmem:[#allocation13 + $0x2f4] ss:$8 sps:$4 sm:$0xff]  }
 0x2b0   : > { %3967 = vmatmul.mubr.bf16.vlgmr.msra.gmra.mrb[0].mxu0 %v2614_v49  ;;  %2313 = vmatpush1.bf16.msra.mxu1 %v5544_v52  ;;  %v5639_v49 = vld [vmem:[#allocation16 + $0x5f4] ss:$8 sps:$4 sm:$0xff]   ;;  %v5637_v52 = vld [vmem:[#allocation16 + $0x5f0] ss:$8 sps:$4 sm:$0xff]  }
 0x2b1   : > { %3976 = vmatpush1.bf16.msra.mxu0 %v5547_v53  ;;  %2314 = vmatprep.subr.bf16.mxu1 %v5552_v54  ;;  %v1646_v53 = vld [vmem:[%s6441_s5 + $0x20] sm:$0xff]  ;;  %s6637_s5 = sld [smem:[#allocation36_spill]] }
 0x2b2   : > { %3977 = vmatprep.subr.bf16.mxu0 %v5555_v55  ;;  %2344 = vmatprep.mubr.bf16.mxu1 %v1653_v56  ;;  %v2604_v54 = vld [vmem:[%s6443_s7 + $0x50] sm:$0xff]  ;;  %v4778_v55 = vcombine.high %v4020_v50, %v4020_v50  ;;  %v4777_v56 = vcombine.low %v4020_v50, %v4020_v50  ;;  %s667_s7 = scalar_lea.vmem [#allocation17], %s4319_s30 }
 0x2b3   : > { %4007 = vmatprep.mubr.bf16.mxu0 %v2617_v57  ;;  %v1652_v57 = vpack.c.bf16 %v1646_v53, %v1646_v53  ;;  %s4097_s20 = sshll.u32 %s667_s7, 4  ;;  %s6517_s20 = int_to_ptr.vmem [resolvable:$true] %s4097_s20 }
 0x2b4   : > { %2315 = vmatpush1.bf16.msra.mxu1 %v5550_v58  ;;  %v2616_v58 = vpack.c.bf16 %v2604_v54, %v2604_v54  ;;  %s5902_s30 = scalar_lea.vmem %s6517_s20, 256  ;;  %p5909_p11 = scmp.lt.s32.totalorder %s6517_s20, %s5907_s17 }
 0x2b5   : > { %3978 = vmatpush1.bf16.msra.mxu0 %v5553_v59  ;;  %2316 = vmatprep.subr.bf16.mxu1 %v5558_v60  ;;  %v4032_v59 = vsel %vm4030_vm0, %v4777_v56, 0  ;;  %v6001_v60 = vmov 0   ;;  %p5903_p12 = scmp.ne.s32.totalorder %s6517_s20, %s5902_s30  ;;  %p5910_p5 = scmp.lt.s32.totalorder %s5908_s3, %s5902_s30 }
 0x2b6   : > { %3979 = vmatprep.subr.bf16.mxu0 %v5561_v61  ;;  %v4018_v61 = vld [vmem:[%s676_s12] sm:$0xff] }
 0x2b7   : > { %p5904_p7 = pnand %p5903_p12, %p6639_p0  ;;  %p5911_p2 = por %p5910_p5, %p5909_p11 }
 0x2b8   : > { %2317 = vmatpush1.bf16.msra.mxu1 %v5556_v62  ;;  %v4019_v62 = vpack.c.bf16 %v4018_v61, %v4018_v61 }
 0x2b9   : > { %3980 = vmatpush1.bf16.msra.mxu0 %v5559_v63  ;;  %2318 = vmatprep.subr.bf16.mxu1 %v5564_v0  ;;  %v1391_v63 = vlaneseq  ;;  %p5905_p9 = pneg %p5904_p7 }
 0x2ba   : > { %3981 = vmatprep.subr.bf16.mxu0 %v5567_v1 }
 0x2bb   : > { %v1392_v0 = vshrl.u32 %v1391_v63, 7  ;;  %p5912_p13 = pnand %p5911_p2, %p5905_p9 }
 0x2bc   : > { %2319 = vmatpush1.bf16.msra.mxu1 %v5562_v2 }
 0x2bd   : > { %3982 = vmatpush1.bf16.msra.mxu0 %v5565_v3  ;;  %2320 = vmatprep.subr.bf16.mxu1 %v5570_v4  ;;  %v1393_v4 = vsub.s32 0, %v1392_v0 }
 0x2be   : > { %3983 = vmatprep.subr.bf16.mxu0 %v5573_v5 }
 0x2c0   : > { %2321 = vmatpush1.bf16.msra.mxu1 %v5568_v6  ;;  %v678_v6 = vld [vmem:[%s6637_s5] sm:$0x3] }
 0x2c1   : > { %3984 = vmatpush1.bf16.msra.mxu0 %v5571_v7  ;;  %2322 = vmatprep.subr.bf16.mxu1 %v5576_v8  ;;  %v1397_v7 = vsub.s32 1, %v1392_v0  ;;  %v1394_v8 = vrot.slane %v678_v6, %v1393_v4 }
 0x2c2   : > { %3985 = vmatprep.subr.bf16.mxu0 %v5579_v9 }
 0x2c3   : > { %v1398_v9 = vrot.slane %v678_v6, %v1397_v7 }
 0x2c4   : > { %2323 = vmatpush1.bf16.msra.mxu1 %v5574_v10 }
 0x2c5   : > { %3986 = vmatpush1.bf16.msra.mxu0 %v5577_v11  ;;  %2324 = vmatprep.subr.bf16.mxu1 %v5582_v12 }
 0x2c6   : > { %3987 = vmatprep.subr.bf16.mxu0 %v5585_v13 }
 0x2c8   : > { %2325 = vmatpush1.bf16.msra.mxu1 %v5580_v14 }
 0x2c9   : > { %3988 = vmatpush1.bf16.msra.mxu0 %v5583_v15  ;;  %2326 = vmatprep.subr.bf16.mxu1 %v5588_v16 }
 0x2ca   : > { %3989 = vmatprep.subr.bf16.mxu0 %v5591_v17 }
 0x2cc   : > { %2327 = vmatpush1.bf16.msra.mxu1 %v5586_v18 }
 0x2cd   : > { %3990 = vmatpush1.bf16.msra.mxu0 %v5589_v19  ;;  %2328 = vmatprep.subr.bf16.mxu1 %v5594_v20 }
 0x2ce   : > { %3991 = vmatprep.subr.bf16.mxu0 %v5597_v21 }
 0x2d0   : > { %2329 = vmatpush1.bf16.msra.mxu1 %v5592_v22 }
 0x2d1   : > { %3992 = vmatpush1.bf16.msra.mxu0 %v5595_v23  ;;  %2330 = vmatprep.subr.bf16.mxu1 %v5600_v24 }
 0x2d2   : > { %3993 = vmatprep.subr.bf16.mxu0 %v5603_v25 }
 0x2d4   : > { %2331 = vmatpush1.bf16.msra.mxu1 %v5598_v26 }
 0x2d5   : > { %3994 = vmatpush1.bf16.msra.mxu0 %v5601_v27  ;;  %2332 = vmatprep.subr.bf16.mxu1 %v5606_v28 }
 0x2d6   : > { %3995 = vmatprep.subr.bf16.mxu0 %v5609_v29 }
 0x2d8   : > { %2333 = vmatpush1.bf16.msra.mxu1 %v5604_v30 }
 0x2d9   : > { %3996 = vmatpush1.bf16.msra.mxu0 %v5607_v31  ;;  %2334 = vmatprep.subr.bf16.mxu1 %v5612_v32 }
 0x2da   : > { %3997 = vmatprep.subr.bf16.mxu0 %v5615_v33 }
 0x2dc   : > { %2335 = vmatpush1.bf16.msra.mxu1 %v5610_v34 }
 0x2dd   : > { %3998 = vmatpush1.bf16.msra.mxu0 %v5613_v35  ;;  %2336 = vmatprep.subr.bf16.mxu1 %v5618_v36 }
 0x2de   : > { %3999 = vmatprep.subr.bf16.mxu0 %v5621_v37 }
 0x2e0   : > { %2337 = vmatpush1.bf16.msra.mxu1 %v5616_v38 }
 0x2e1   : > { %4000 = vmatpush1.bf16.msra.mxu0 %v5619_v39  ;;  %2338 = vmatprep.subr.bf16.mxu1 %v5624_v40 }
 0x2e2   : > { %4001 = vmatprep.subr.bf16.mxu0 %v5627_v41 }
 0x2e4   : > { %2339 = vmatpush1.bf16.msra.mxu1 %v5622_v42 }
 0x2e5   : > { %4002 = vmatpush1.bf16.msra.mxu0 %v5625_v43  ;;  %2340 = vmatprep.subr.bf16.mxu1 %v5630_v44 }
 0x2e6   : > { %4003 = vmatprep.subr.bf16.mxu0 %v5633_v45 }
 0x2e8   : > { %2341 = vmatpush1.bf16.msra.mxu1 %v5628_v46 }
 0x2e9   : > { %4004 = vmatpush1.bf16.msra.mxu0 %v5631_v47  ;;  %2342 = vmatprep.subr.bf16.mxu1 %v5636_v48 }
 0x2ea   : > { %4005 = vmatprep.subr.bf16.mxu0 %v5639_v49 }
 0x2ec   : > { %2343 = vmatpush1.bf16.msra.mxu1 %v5634_v51 }
 0x2ed   : > { %4006 = vmatpush1.bf16.msra.mxu0 %v5637_v52 }
 0x2ee   : > { %4779 = vmatprep.subr.msk.bf16.mxu0 %vm4030_vm0, %v4778_v55 }
 0x2ef   : > { %2345 = vmatmul.mubr.bf16.vlgmr.msra.gmra.mrb[0].mxu1 %v1652_v57 }
 0x2f0   : > { %4008 = vmatmul.mubr.bf16.vlgmr.msra.gmra.mrb[0].mxu0 %v2616_v58 }
 0x2f1   : > { %4038 = vmatpush1.bf16.msra.mxu0 %v4032_v59  ;;  %4069 = vmatprep.mubr.bf16.mxu0 %v6001_v60 }
 0x2fc   : > { %4780 = vmatmul.mubr.msk.bf16.vlgmr.msra.gmra.mrb[0].mxu0 %vm4026_vm1, %v4019_v62 }
 0x3c2   : > { %v2346_v1 = vpop.f32.mrb[0].mxu1 }
 0x3c3   : > { %v2348_v2 = vpop.f32.mrb[1].mxu1  ;;  %v4789_v10 = vadd.f32 %v2346_v1, %v1394_v8 }
 0x3c4   : > { %v2350_v3 = vpop.f32.mrb[2].mxu1  ;;  %v4791_v11 = vadd.f32 %v2348_v2, %v1398_v9 }
 0x3c5   : > { %v2351_v5 = vpop.f32.mrb[3].mxu1 }
 0x3cf   : > { %v4071_v12 = vpop.f32.mrb[0].mxu0 }
 0x3d0   : > { %v4790_v13 = vadd.f32 %v4789_v10, %v4071_v12  ;;  %v4073_v14 = vpop.f32.mrb[1].mxu0 }
 0x3d1   : > { %v4792_v15 = vadd.f32 %v4791_v11, %v4073_v14  ;;  %v4075_v16 = vpop.f32.mrb[2].mxu0 }
 0x3d2   : > { %4080 = vst [vmem:[%s667_s7] sm:$0xff] %v4790_v13  ;;  %v4076_v17 = vpop.f32.mrb[3].mxu0 }
 0x3d3   : > { %4081 = vst [vmem:[%s667_s7 + $0x8] sm:$0xff] %v4792_v15 }
 0x3d4   : > { %5915 = shalt.err (!%p5912_p13)
}
 0x3d5   : > { %s5916_s24 = scalar_lea.hbm %s6515_s19, 256  ;;  %s5920_s22 = scalar_lea.hbm %s6638_s11, 512 }
 0x3d6   : > { %p5917_p6 = scmp.ne.s32.totalorder %s6515_s19, %s5916_s24  ;;  %p5921_p8 = scmp.lt.u32.totalorder %s6515_s19, %s6638_s11 }
 0x3d7   : > { %p5922_p4 = scmp.lt.u32.totalorder %s5920_s22, %s5916_s24  ;;  %p5924_p12 = scmp.lt.u32.totalorder %s5916_s24, %s6515_s19 }
 0x3d8   : > { %p5918_p3 = pnand %p5917_p6, %p6639_p0 }
 0x3d9   : > { %p5923_p10 = por %p5922_p4, %p5921_p8 }
 0x3da   : > { %p5919_p1 = pneg %p5918_p3 }
 0x3db   : > { %p5925_p7 = por %p5924_p12, %p5923_p10 }
 0x3dd   : > { %p5926_p9 = pnand %p5925_p7, %p5919_p1 }
 0x3df   : > { %5929 = shalt.err (!%p5926_p9)
}
 0x3e0   : > { %4881 = dma.vmem_to_hbm [thread:$0]  (%p6639_p0), %s6517_s20, 256, %s6515_s19, %s4083_s14  }
 0x3e1 PF: > { %s6640_s12 = sld [smem:[#allocation28_spill]]  ;;  %s4109_s18 = sand.u32 1, %s5976_s25  }
 0x3e2   : > { %p6642_p5 = scmp.ge.s32.totalorder %s5988_s28, 2  ;;  %s4110_s6 = scalar_lea.sflag [#allocation4], %s4109_s18 }
 0x3e7   : > { %p6641_p11 = scmp.ne.s32.totalorder %s6640_s12, 0 }
 0x3e9   : > { %p4913_p2 = pnand %p6642_p5, %p6641_p11 }
 0x3eb   : > { %5971 = dma.done.wait (!%p4913_p2), %s4110_s6, 256  }
 0x3ec   : > { %5973 = vsyncadd (!%p4913_p2), %s4110_s6, 4294967040  ;;  %s6643_s28 = sld [smem:[#allocation26_spill]]  ;;  %s6644_s5 = sld [smem:[#allocation25_spill]] }
 0x3ed   : > { %s6645_s27 = sld [smem:[#allocation27_spill]]  ;;  %s6646_s25 = smov %s5980_s26 }
 0x3f2   : > { %p34_p13 = scmp.ge.s32.totalorder %s6643_s28, 4   ;;  %s6647_s26 = smov %s6644_s5 }
 0x3f4   :  { %36 = sbr.rel (!%p34_p13) target bundleno = 21 (0x15), region = 180 }
 0x3fb   :  { %4115 = vsyncpa [#allocation3], 1 }
 0x3fc   :  { %4117 = vsyncpa [#allocation3 + $0x1], 1 }
 0x3fd   :  { %4118 = vsyncpa [#allocation6], 1 }
 0x3fe   :  { %4120 = vsyncpa [#allocation6 + $0x1], 1 }
 0x3ff   :  { %4121 = vsyncpa [#allocation9], 1 }
 0x400   :  { %4123 = vsyncpa [#allocation9 + $0x1], 1 }
 0x401   :  { %4124 = vsyncpa [#allocation12], 1 }
 0x402   :  { %4125 = vsyncpa [#allocation15], 1 }
 0x403   :  { %4126 = vsyncpa [#allocation4], 1 }
 0x404   :  { %4128 = vsyncpa [#allocation4 + $0x1], 1 }

</bundles_post_ra>
